<compile_context>
chip_gen: v6e
topology: v6e:2x2x1
jax: 0.10.0
libtpu: 0.0.40
codegen_flags: <defaults>
</compile_context>

<pallas_src>
import math
import jax
import jax.numpy as jnp
from jax.experimental import pallas as pl
from jax.experimental.pallas import tpu as pltpu

# ------------------------- model config (small) -------------------------
NTOKEN     = 50
NTOKEN_PAD = 128                 # lane-dense logits / one-hot width
D_MODEL    = 32
NHEAD      = 4
D_HEAD     = D_MODEL // NHEAD
D_HID      = 64
NLAYERS    = 2
SEQ        = 8
BATCH      = 2
LN_EPS     = 1e-5
QKV_PAD    = 128                 # fused q|k|v output width (3*D_MODEL=96 -> 128 lanes)


# ------------------------- in-kernel helpers -------------------------
def _ln(x, g, b):
    """LayerNorm over last dim (biased variance, eps=1e-5) — matches nn.LayerNorm."""
    mu = jnp.mean(x, axis=-1, keepdims=True)
    var = jnp.mean(jnp.square(x - mu), axis=-1, keepdims=True)
    return (x - mu) * jax.lax.rsqrt(var + LN_EPS) * g + b


# ------------------------- fused kernel -------------------------
def fused_transformer_kernel(tok_ref, emb_ref, pe_ref, mask_ref,
                             wqkv_ref, wo_ref, w1_ref, w2_ref, vecs_ref,
                             decw_ref, decb_ref, out_ref):
    """Entire transformer forward for one (B*S, D) activation slab.

    tok_ref  : (B*S, 1) int32 tokens (batch-major flattening)
    emb_ref  : (NTOKEN_PAD, D) embedding table (row-padded, *sqrt(D) folded in)
    pe_ref   : (B*S, D) positional encodings (pre-tiled over batch)
    mask_ref : (S, S) additive float mask
    wqkv_ref : (L, D, 128) fused [Q|K|V|pad] weights (Q pre-scaled by 1/sqrt(Dh))
    wo_ref   : (L, D, D)   attention output projection (x @ W layout)
    w1_ref   : (L, D, D_HID), w2_ref : (L, D_HID, D)  FFN weights (x @ W layout)
    vecs_ref : (L, 8, 128) packed per-layer row params
               rows: 0 bqkv | 1 bo | 2 ln1.g | 3 ln1.b | 4 b1 | 5 b2 | 6 ln2.g | 7 ln2.b
    decw_ref : (D, NTOKEN_PAD), decb_ref : (1, NTOKEN_PAD)
    out_ref  : (B*S, NTOKEN_PAD) padded logits
    """
    BS, D = pe_ref.shape
    S = mask_ref.shape[0]
    B = BS // S
    L = wqkv_ref.shape[0]
    H = NHEAD
    Dh = D // H
    NPAD = emb_ref.shape[0]
    DH = w1_ref.shape[2]

    # ---- embedding gather (one-hot matmul on the MXU) + pos-enc ----
    tok = tok_ref[...]                                               # (BS, 1) int32
    iota = jax.lax.broadcasted_iota(jnp.int32, (BS, NPAD), 1)
    onehot = (iota == tok).astype(jnp.float32)                       # (BS, NPAD)
    x = jnp.dot(onehot, emb_ref[...], preferred_element_type=jnp.float32) + pe_ref[...]
    # TODO(synk): dropout (p=0.5 pos-enc / p=0.1 in-layer) is identity — eval semantics.

    # hoisted mask broadcast (JAX does not CSE broadcast_in_dim per head/layer)
    mask_b = jnp.broadcast_to(mask_ref[...].reshape(1, S, S), (B, S, S))

    for li in range(L):                                              # layers unrolled
        vec = vecs_ref[li]                                           # (8, 128)
        bqkv = vec[0:1, :]                                           # fused qkv bias
        bo   = vec[1:2, 0:D]
        g1   = vec[2:3, 0:D]
        be1  = vec[3:4, 0:D]
        b1   = vec[4:5, 0:DH]
        b2   = vec[5:6, 0:D]
        g2   = vec[6:7, 0:D]
        be2  = vec[7:8, 0:D]

        # ---- fused QKV projection: one 128-lane-wide MXU push per layer ----
        qkv = jnp.dot(x, wqkv_ref[li], preferred_element_type=jnp.float32) + bqkv
        q = qkv[:, 0:D]              # 1/sqrt(Dh) already folded into W/b
        k = qkv[:, D:2 * D]
        v = qkv[:, 2 * D:3 * D]

        # ---- per-head scores/softmax/context (static lane slices, no matmuls per head
        #      besides the inherent score/ctx einsums) ----
        ctx_parts = []
        for h in range(H):
            lo = h * Dh
            qh = q[:, lo:lo + Dh].reshape(B, S, Dh)
            kh = k[:, lo:lo + Dh].reshape(B, S, Dh)
            vh = v[:, lo:lo + Dh].reshape(B, S, Dh)
            s = jnp.einsum('bqd,bkd->bqk', qh, kh,
                           preferred_element_type=jnp.float32) + mask_b
            s = s - jnp.max(s, axis=-1, keepdims=True)
            p = jnp.exp(s)
            p = p * pl.reciprocal(jnp.sum(p, axis=-1, keepdims=True), approx=True)
            ctx_parts.append(
                jnp.einsum('bqk,bkd->bqd', p, vh,
                           preferred_element_type=jnp.float32).reshape(BS, Dh))
        ctx = jnp.concatenate(ctx_parts, axis=-1)                    # (BS, D) head-major

        # ---- fused output projection: single (D,D) matmul, no serial adds ----
        attn = jnp.dot(ctx, wo_ref[li], preferred_element_type=jnp.float32) + bo

        # ---- post-norm residual + FFN (relu) + post-norm residual ----
        x = _ln(x + attn, g1, be1)
        hdn = jnp.maximum(
            jnp.dot(x, w1_ref[li], preferred_element_type=jnp.float32) + b1, 0.0)
        ff = jnp.dot(hdn, w2_ref[li], preferred_element_type=jnp.float32) + b2
        x = _ln(x + ff, g2, be2)

    # ---- decoder: lane-dense padded logits (unmasked stores) ----
    out_ref[...] = (jnp.dot(x, decw_ref[...], preferred_element_type=jnp.float32)
                    + decb_ref[...])


# ------------------------- parameters -------------------------
def init_params(key):
    keys = jax.random.split(key, 2 + NLAYERS)
    emb   = jax.random.uniform(keys[0], (NTOKEN, D_MODEL), jnp.float32, -0.1, 0.1)
    dec_w = jax.random.uniform(keys[1], (NTOKEN, D_MODEL), jnp.float32, -0.1, 0.1)

    # sqrt(d_model) folded into the (row-padded) embedding table at init
    emb_pad = (jnp.zeros((NTOKEN_PAD, D_MODEL), jnp.float32)
               .at[:NTOKEN].set(emb * math.sqrt(D_MODEL)))
    dec_w_t = (jnp.zeros((D_MODEL, NTOKEN_PAD), jnp.float32)
               .at[:, :NTOKEN].set(dec_w.T))
    dec_b = jnp.zeros((1, NTOKEN_PAD), jnp.float32)

    # positional-encoding buffer (same formula as PositionalEncoding)
    max_len = 64
    position = jnp.arange(max_len, dtype=jnp.float32)[:, None]
    div_term = jnp.exp(jnp.arange(0, D_MODEL, 2, dtype=jnp.float32)
                       * (-math.log(10000.0) / D_MODEL))
    pe = jnp.zeros((max_len, D_MODEL), jnp.float32)
    pe = pe.at[:, 0::2].set(jnp.sin(position * div_term))
    pe = pe.at[:, 1::2].set(jnp.cos(position * div_term))

    attn_scale = 1.0 / math.sqrt(D_HEAD)
    wqkv_l, wo_l, w1_l, w2_l, vecs_l = [], [], [], [], []
    for li in range(NLAYERS):
        k = jax.random.split(keys[2 + li], 4)
        s = 1.0 / math.sqrt(D_MODEL)
        wqkv = jax.random.uniform(k[0], (3 * D_MODEL, D_MODEL), jnp.float32, -s, s)
        bqkv = jnp.zeros((3 * D_MODEL,), jnp.float32)
        wo   = jax.random.uniform(k[1], (D_MODEL, D_MODEL), jnp.float32, -s, s)
        bo   = jnp.zeros((D_MODEL,), jnp.float32)
        w1   = jax.random.uniform(k[2], (D_HID, D_MODEL), jnp.float32, -s, s)
        b1   = jnp.zeros((D_HID,), jnp.float32)
        sh = 1.0 / math.sqrt(D_HID)
        w2   = jax.random.uniform(k[3], (D_MODEL, D_HID), jnp.float32, -sh, sh)
        b2   = jnp.zeros((D_MODEL,), jnp.float32)

        # fused lane-padded QKV weight for `x @ W`: columns = [Q | K | V | pad],
        # head-major within each block (matches torch's reshape(H, Dh)),
        # with the 1/sqrt(Dh) attention scale folded into the Q block.
        wqkv_t = wqkv.T                                              # (D, 3D)
        wqkv_t = wqkv_t.at[:, :D_MODEL].multiply(attn_scale)
        wqkv_pad = (jnp.zeros((D_MODEL, QKV_PAD), jnp.float32)
                    .at[:, :3 * D_MODEL].set(wqkv_t))
        bqkv = bqkv.at[:D_MODEL].multiply(attn_scale)

        # all per-layer 1-row params packed into one (8, 128) VMEM tile
        vec = jnp.zeros((8, 128), jnp.float32)
        vec = vec.at[0, :3 * D_MODEL].set(bqkv)
        vec = vec.at[1, :D_MODEL].set(bo)
        vec = vec.at[2, :D_MODEL].set(jnp.ones((D_MODEL,), jnp.float32))   # ln1 gamma
        vec = vec.at[3, :D_MODEL].set(jnp.zeros((D_MODEL,), jnp.float32))  # ln1 beta
        vec = vec.at[4, :D_HID].set(b1)
        vec = vec.at[5, :D_MODEL].set(b2)
        vec = vec.at[6, :D_MODEL].set(jnp.ones((D_MODEL,), jnp.float32))   # ln2 gamma
        vec = vec.at[7, :D_MODEL].set(jnp.zeros((D_MODEL,), jnp.float32))  # ln2 beta

        wqkv_l.append(wqkv_pad)
        wo_l.append(wo.T)            # (D_in, D_out): ctx @ Wo^T
        w1_l.append(w1.T)            # (D, D_HID)
        w2_l.append(w2.T)            # (D_HID, D)
        vecs_l.append(vec)

    return dict(
        emb=emb_pad, pe=pe, dec_w_t=dec_w_t, dec_b=dec_b,
        wqkv=jnp.stack(wqkv_l), wo=jnp.stack(wo_l),
        w1=jnp.stack(w1_l), w2=jnp.stack(w2_l), vecs=jnp.stack(vecs_l))


# ------------------------- full forward -------------------------
def transformer_forward(params, src, src_mask):
    """src: (S, B) int32 tokens; src_mask: (S, S) additive float mask.
    Returns logits of shape (S, B, ntoken) — same as the PyTorch module."""
    S, B = src.shape
    tok = src.T.reshape(B * S, 1).astype(jnp.int32)        # batch-major flat tokens
    pe_bs = jnp.tile(params["pe"][:S], (B, 1))             # (B*S, D)

    vmem = pl.BlockSpec(memory_space=pltpu.MemorySpace.VMEM)
    args = (tok, params["emb"], pe_bs, src_mask,
            params["wqkv"], params["wo"], params["w1"], params["w2"],
            params["vecs"], params["dec_w_t"], params["dec_b"])

    logits_pad = pl.pallas_call(
        fused_transformer_kernel,
        out_shape=jax.ShapeDtypeStruct((B * S, NTOKEN_PAD), jnp.float32),
        in_specs=[vmem] * len(args),
        out_specs=vmem,
    )(*args)

    logits = logits_pad.reshape(B, S, NTOKEN_PAD)[:, :, :NTOKEN]   # drop lane padding
    return jnp.transpose(logits, (1, 0, 2))                        # (S, B, ntoken)


if __name__ == "__main__":
    key = jax.random.PRNGKey(0)
    params = init_params(key)
    src = jax.random.randint(jax.random.PRNGKey(1), (SEQ, BATCH), 0, NTOKEN,
                             dtype=jnp.int32)
    # causal additive mask, same as nn.Transformer.generate_square_subsequent_mask
    # (-inf is safe here: the diagonal is always unmasked so row-max stays finite)
    src_mask = jnp.where(jnp.triu(jnp.ones((SEQ, SEQ), jnp.float32), k=1) > 0,
                         -jnp.inf, 0.0).astype(jnp.float32)

    fwd = jax.jit(transformer_forward)
    out = jax.block_until_ready(fwd(params, src, src_mask))
    assert out.shape == (SEQ, BATCH, NTOKEN)
    assert bool(jnp.all(jnp.isfinite(out)))
    print("KERNEL_OK")
</pallas_src>

<mosaic_0001>
module attributes {stable_mosaic.version = 11 : i64} {
  func.func @fused_transformer_kernel(%arg0: memref<16x1xi32, #tpu.memory_space<vmem>>, %arg1: memref<128x32xf32, #tpu.memory_space<vmem>>, %arg2: memref<16x32xf32, #tpu.memory_space<vmem>>, %arg3: memref<8x8xf32, #tpu.memory_space<vmem>>, %arg4: memref<2x32x128xf32, #tpu.memory_space<vmem>>, %arg5: memref<2x32x32xf32, #tpu.memory_space<vmem>>, %arg6: memref<2x32x64xf32, #tpu.memory_space<vmem>>, %arg7: memref<2x64x32xf32, #tpu.memory_space<vmem>>, %arg8: memref<2x8x128xf32, #tpu.memory_space<vmem>>, %arg9: memref<32x128xf32, #tpu.memory_space<vmem>>, %arg10: memref<1x128xf32, #tpu.memory_space<vmem>>, %arg11: memref<16x128xf32, #tpu.memory_space<vmem>>) attributes {dimension_semantics = [], scalar_prefetch = 0 : i64, scratch_operands = 0 : i64, tpu.core_type = #tpu.core_type<tc>} {
    %c0 = arith.constant 0 : index
    %c0_0 = arith.constant 0 : index
    %0 = vector.load %arg0[%c0, %c0_0] : memref<16x1xi32, #tpu.memory_space<vmem>>, vector<16x1xi32>
    %1 = tpu.iota {dimensions = array<i32: 1>} : vector<16x128xi32>
    %2 = vector.broadcast %0 : vector<16x1xi32> to vector<16x128xi32>
    %3 = arith.cmpi eq, %1, %2 : vector<16x128xi32>
    %4 = arith.extui %3 : vector<16x128xi1> to vector<16x128xi32>
    %5 = arith.sitofp %4 : vector<16x128xi32> to vector<16x128xf32>
    %c0_1 = arith.constant 0 : index
    %c0_2 = arith.constant 0 : index
    %6 = vector.load %arg1[%c0_1, %c0_2] : memref<128x32xf32, #tpu.memory_space<vmem>>, vector<128x32xf32>
    %cst = arith.constant dense<0.000000e+00> : vector<16x32xf32>
    %7 = tpu.matmul %5, %6, %cst {dimension_numbers = #tpu.dot_dimension_numbers<[1], [0], [0], [1], [0, 0, 1, 1], [], []>} : vector<16x128xf32>, vector<128x32xf32>, vector<16x32xf32> -> vector<16x32xf32>
    %c0_3 = arith.constant 0 : index
    %c0_4 = arith.constant 0 : index
    %8 = vector.load %arg2[%c0_3, %c0_4] : memref<16x32xf32, #tpu.memory_space<vmem>>, vector<16x32xf32>
    %9 = arith.addf %7, %8 : vector<16x32xf32>
    %c0_5 = arith.constant 0 : index
    %c0_6 = arith.constant 0 : index
    %10 = vector.load %arg3[%c0_5, %c0_6] : memref<8x8xf32, #tpu.memory_space<vmem>>, vector<8x8xf32>
    %11 = vector.shape_cast %10 : vector<8x8xf32> to vector<1x8x8xf32>
    %12 = vector.shape_cast %11 : vector<1x8x8xf32> to vector<1x8x8xf32>
    %13 = vector.broadcast %12 : vector<1x8x8xf32> to vector<2x8x8xf32>
    %c0_7 = arith.constant 0 : index
    %c0_8 = arith.constant 0 : index
    %c0_9 = arith.constant 0 : index
    %14 = vector.load %arg8[%c0_7, %c0_8, %c0_9] : memref<2x8x128xf32, #tpu.memory_space<vmem>>, vector<1x8x128xf32>
    %15 = vector.shape_cast %14 : vector<1x8x128xf32> to vector<8x128xf32>
    %16 = vector.extract_strided_slice %15 {offsets = [0, 0], sizes = [1, 128], strides = [1, 1]} : vector<8x128xf32> to vector<1x128xf32>
    %17 = vector.extract_strided_slice %15 {offsets = [1, 0], sizes = [1, 32], strides = [1, 1]} : vector<8x128xf32> to vector<1x32xf32>
    %18 = vector.extract_strided_slice %15 {offsets = [2, 0], sizes = [1, 32], strides = [1, 1]} : vector<8x128xf32> to vector<1x32xf32>
    %19 = vector.extract_strided_slice %15 {offsets = [3, 0], sizes = [1, 32], strides = [1, 1]} : vector<8x128xf32> to vector<1x32xf32>
    %20 = vector.extract_strided_slice %15 {offsets = [4, 0], sizes = [1, 64], strides = [1, 1]} : vector<8x128xf32> to vector<1x64xf32>
    %21 = vector.extract_strided_slice %15 {offsets = [5, 0], sizes = [1, 32], strides = [1, 1]} : vector<8x128xf32> to vector<1x32xf32>
    %22 = vector.extract_strided_slice %15 {offsets = [6, 0], sizes = [1, 32], strides = [1, 1]} : vector<8x128xf32> to vector<1x32xf32>
    %23 = vector.extract_strided_slice %15 {offsets = [7, 0], sizes = [1, 32], strides = [1, 1]} : vector<8x128xf32> to vector<1x32xf32>
    %c0_10 = arith.constant 0 : index
    %c0_11 = arith.constant 0 : index
    %c0_12 = arith.constant 0 : index
    %24 = vector.load %arg4[%c0_10, %c0_11, %c0_12] : memref<2x32x128xf32, #tpu.memory_space<vmem>>, vector<1x32x128xf32>
    %25 = vector.shape_cast %24 : vector<1x32x128xf32> to vector<32x128xf32>
    %cst_13 = arith.constant dense<0.000000e+00> : vector<16x128xf32>
    %26 = tpu.matmul %9, %25, %cst_13 {dimension_numbers = #tpu.dot_dimension_numbers<[1], [0], [0], [1], [0, 0, 1, 1], [], []>} : vector<16x32xf32>, vector<32x128xf32>, vector<16x128xf32> -> vector<16x128xf32>
    %27 = vector.broadcast %16 : vector<1x128xf32> to vector<16x128xf32>
    %28 = arith.addf %26, %27 : vector<16x128xf32>
    %29 = vector.extract_strided_slice %28 {offsets = [0, 0], sizes = [16, 32], strides = [1, 1]} : vector<16x128xf32> to vector<16x32xf32>
    %30 = vector.extract_strided_slice %28 {offsets = [0, 32], sizes = [16, 32], strides = [1, 1]} : vector<16x128xf32> to vector<16x32xf32>
    %31 = vector.extract_strided_slice %28 {offsets = [0, 64], sizes = [16, 32], strides = [1, 1]} : vector<16x128xf32> to vector<16x32xf32>
    %32 = vector.extract_strided_slice %29 {offsets = [0, 0], sizes = [16, 8], strides = [1, 1]} : vector<16x32xf32> to vector<16x8xf32>
    %33 = vector.shape_cast %32 : vector<16x8xf32> to vector<2x8x8xf32>
    %34 = vector.extract_strided_slice %30 {offsets = [0, 0], sizes = [16, 8], strides = [1, 1]} : vector<16x32xf32> to vector<16x8xf32>
    %35 = vector.shape_cast %34 : vector<16x8xf32> to vector<2x8x8xf32>
    %36 = vector.extract_strided_slice %31 {offsets = [0, 0], sizes = [16, 8], strides = [1, 1]} : vector<16x32xf32> to vector<16x8xf32>
    %37 = vector.shape_cast %36 : vector<16x8xf32> to vector<2x8x8xf32>
    "tpu.trace_start"() <{level = 10 : i32, message = "bqd,bkd->bqk"}> : () -> ()
    %cst_14 = arith.constant dense<0.000000e+00> : vector<2x8x8xf32>
    %38 = tpu.matmul %33, %35, %cst_14 {dimension_numbers = #tpu.dot_dimension_numbers<[2], [2], [1], [1], [0, 0, 0, 1, 1, 1], [0], [0]>} : vector<2x8x8xf32>, vector<2x8x8xf32>, vector<2x8x8xf32> -> vector<2x8x8xf32>
    "tpu.trace_stop"() : () -> ()
    %39 = arith.addf %38, %13 : vector<2x8x8xf32>
    %cst_15 = arith.constant dense<0xFF800000> : vector<2x8xf32>
    %40 = vector.multi_reduction <maximumf>, %39, %cst_15 [2] : vector<2x8x8xf32> to vector<2x8xf32>
    %41 = vector.shape_cast %40 : vector<2x8xf32> to vector<2x8x1xf32>
    %42 = vector.broadcast %41 : vector<2x8x1xf32> to vector<2x8x8xf32>
    %43 = arith.subf %39, %42 : vector<2x8x8xf32>
    %44 = math.exp %43 : vector<2x8x8xf32>
    %cst_16 = arith.constant dense<0.000000e+00> : vector<2x8xf32>
    %45 = vector.multi_reduction <add>, %44, %cst_16 [2] : vector<2x8x8xf32> to vector<2x8xf32>
    %46 = vector.shape_cast %45 : vector<2x8xf32> to vector<2x8x1xf32>
    %47 = tpu.reciprocal %46 {approx = true} : vector<2x8x1xf32> -> vector<2x8x1xf32>
    %48 = vector.broadcast %47 : vector<2x8x1xf32> to vector<2x8x8xf32>
    %49 = arith.mulf %44, %48 : vector<2x8x8xf32>
    "tpu.trace_start"() <{level = 10 : i32, message = "bqk,bkd->bqd"}> : () -> ()
    %cst_17 = arith.constant dense<0.000000e+00> : vector<2x8x8xf32>
    %50 = tpu.matmul %49, %37, %cst_17 {dimension_numbers = #tpu.dot_dimension_numbers<[2], [1], [1], [2], [0, 0, 0, 1, 1, 2], [0], [0]>} : vector<2x8x8xf32>, vector<2x8x8xf32>, vector<2x8x8xf32> -> vector<2x8x8xf32>
    "tpu.trace_stop"() : () -> ()
    %51 = vector.shape_cast %50 : vector<2x8x8xf32> to vector<16x8xf32>
    %52 = vector.extract_strided_slice %29 {offsets = [0, 8], sizes = [16, 8], strides = [1, 1]} : vector<16x32xf32> to vector<16x8xf32>
    %53 = vector.shape_cast %52 : vector<16x8xf32> to vector<2x8x8xf32>
    %54 = vector.extract_strided_slice %30 {offsets = [0, 8], sizes = [16, 8], strides = [1, 1]} : vector<16x32xf32> to vector<16x8xf32>
    %55 = vector.shape_cast %54 : vector<16x8xf32> to vector<2x8x8xf32>
    %56 = vector.extract_strided_slice %31 {offsets = [0, 8], sizes = [16, 8], strides = [1, 1]} : vector<16x32xf32> to vector<16x8xf32>
    %57 = vector.shape_cast %56 : vector<16x8xf32> to vector<2x8x8xf32>
    "tpu.trace_start"() <{level = 10 : i32, message = "bqd,bkd->bqk"}> : () -> ()
    %cst_18 = arith.constant dense<0.000000e+00> : vector<2x8x8xf32>
    %58 = tpu.matmul %53, %55, %cst_18 {dimension_numbers = #tpu.dot_dimension_numbers<[2], [2], [1], [1], [0, 0, 0, 1, 1, 1], [0], [0]>} : vector<2x8x8xf32>, vector<2x8x8xf32>, vector<2x8x8xf32> -> vector<2x8x8xf32>
    "tpu.trace_stop"() : () -> ()
    %59 = arith.addf %58, %13 : vector<2x8x8xf32>
    %cst_19 = arith.constant dense<0xFF800000> : vector<2x8xf32>
    %60 = vector.multi_reduction <maximumf>, %59, %cst_19 [2] : vector<2x8x8xf32> to vector<2x8xf32>
    %61 = vector.shape_cast %60 : vector<2x8xf32> to vector<2x8x1xf32>
    %62 = vector.broadcast %61 : vector<2x8x1xf32> to vector<2x8x8xf32>
    %63 = arith.subf %59, %62 : vector<2x8x8xf32>
    %64 = math.exp %63 : vector<2x8x8xf32>
    %cst_20 = arith.constant dense<0.000000e+00> : vector<2x8xf32>
    %65 = vector.multi_reduction <add>, %64, %cst_20 [2] : vector<2x8x8xf32> to vector<2x8xf32>
    %66 = vector.shape_cast %65 : vector<2x8xf32> to vector<2x8x1xf32>
    %67 = tpu.reciprocal %66 {approx = true} : vector<2x8x1xf32> -> vector<2x8x1xf32>
    %68 = vector.broadcast %67 : vector<2x8x1xf32> to vector<2x8x8xf32>
    %69 = arith.mulf %64, %68 : vector<2x8x8xf32>
    "tpu.trace_start"() <{level = 10 : i32, message = "bqk,bkd->bqd"}> : () -> ()
    %cst_21 = arith.constant dense<0.000000e+00> : vector<2x8x8xf32>
    %70 = tpu.matmul %69, %57, %cst_21 {dimension_numbers = #tpu.dot_dimension_numbers<[2], [1], [1], [2], [0, 0, 0, 1, 1, 2], [0], [0]>} : vector<2x8x8xf32>, vector<2x8x8xf32>, vector<2x8x8xf32> -> vector<2x8x8xf32>
    "tpu.trace_stop"() : () -> ()
    %71 = vector.shape_cast %70 : vector<2x8x8xf32> to vector<16x8xf32>
    %72 = vector.extract_strided_slice %29 {offsets = [0, 16], sizes = [16, 8], strides = [1, 1]} : vector<16x32xf32> to vector<16x8xf32>
    %73 = vector.shape_cast %72 : vector<16x8xf32> to vector<2x8x8xf32>
    %74 = vector.extract_strided_slice %30 {offsets = [0, 16], sizes = [16, 8], strides = [1, 1]} : vector<16x32xf32> to vector<16x8xf32>
    %75 = vector.shape_cast %74 : vector<16x8xf32> to vector<2x8x8xf32>
    %76 = vector.extract_strided_slice %31 {offsets = [0, 16], sizes = [16, 8], strides = [1, 1]} : vector<16x32xf32> to vector<16x8xf32>
    %77 = vector.shape_cast %76 : vector<16x8xf32> to vector<2x8x8xf32>
    "tpu.trace_start"() <{level = 10 : i32, message = "bqd,bkd->bqk"}> : () -> ()
    %cst_22 = arith.constant dense<0.000000e+00> : vector<2x8x8xf32>
    %78 = tpu.matmul %73, %75, %cst_22 {dimension_numbers = #tpu.dot_dimension_numbers<[2], [2], [1], [1], [0, 0, 0, 1, 1, 1], [0], [0]>} : vector<2x8x8xf32>, vector<2x8x8xf32>, vector<2x8x8xf32> -> vector<2x8x8xf32>
    "tpu.trace_stop"() : () -> ()
    %79 = arith.addf %78, %13 : vector<2x8x8xf32>
    %cst_23 = arith.constant dense<0xFF800000> : vector<2x8xf32>
    %80 = vector.multi_reduction <maximumf>, %79, %cst_23 [2] : vector<2x8x8xf32> to vector<2x8xf32>
    %81 = vector.shape_cast %80 : vector<2x8xf32> to vector<2x8x1xf32>
    %82 = vector.broadcast %81 : vector<2x8x1xf32> to vector<2x8x8xf32>
    %83 = arith.subf %79, %82 : vector<2x8x8xf32>
    %84 = math.exp %83 : vector<2x8x8xf32>
    %cst_24 = arith.constant dense<0.000000e+00> : vector<2x8xf32>
    %85 = vector.multi_reduction <add>, %84, %cst_24 [2] : vector<2x8x8xf32> to vector<2x8xf32>
    %86 = vector.shape_cast %85 : vector<2x8xf32> to vector<2x8x1xf32>
    %87 = tpu.reciprocal %86 {approx = true} : vector<2x8x1xf32> -> vector<2x8x1xf32>
    %88 = vector.broadcast %87 : vector<2x8x1xf32> to vector<2x8x8xf32>
    %89 = arith.mulf %84, %88 : vector<2x8x8xf32>
    "tpu.trace_start"() <{level = 10 : i32, message = "bqk,bkd->bqd"}> : () -> ()
    %cst_25 = arith.constant dense<0.000000e+00> : vector<2x8x8xf32>
    %90 = tpu.matmul %89, %77, %cst_25 {dimension_numbers = #tpu.dot_dimension_numbers<[2], [1], [1], [2], [0, 0, 0, 1, 1, 2], [0], [0]>} : vector<2x8x8xf32>, vector<2x8x8xf32>, vector<2x8x8xf32> -> vector<2x8x8xf32>
    "tpu.trace_stop"() : () -> ()
    %91 = vector.shape_cast %90 : vector<2x8x8xf32> to vector<16x8xf32>
    %92 = vector.extract_strided_slice %29 {offsets = [0, 24], sizes = [16, 8], strides = [1, 1]} : vector<16x32xf32> to vector<16x8xf32>
    %93 = vector.shape_cast %92 : vector<16x8xf32> to vector<2x8x8xf32>
    %94 = vector.extract_strided_slice %30 {offsets = [0, 24], sizes = [16, 8], strides = [1, 1]} : vector<16x32xf32> to vector<16x8xf32>
    %95 = vector.shape_cast %94 : vector<16x8xf32> to vector<2x8x8xf32>
    %96 = vector.extract_strided_slice %31 {offsets = [0, 24], sizes = [16, 8], strides = [1, 1]} : vector<16x32xf32> to vector<16x8xf32>
    %97 = vector.shape_cast %96 : vector<16x8xf32> to vector<2x8x8xf32>
    "tpu.trace_start"() <{level = 10 : i32, message = "bqd,bkd->bqk"}> : () -> ()
    %cst_26 = arith.constant dense<0.000000e+00> : vector<2x8x8xf32>
    %98 = tpu.matmul %93, %95, %cst_26 {dimension_numbers = #tpu.dot_dimension_numbers<[2], [2], [1], [1], [0, 0, 0, 1, 1, 1], [0], [0]>} : vector<2x8x8xf32>, vector<2x8x8xf32>, vector<2x8x8xf32> -> vector<2x8x8xf32>
    "tpu.trace_stop"() : () -> ()
    %99 = arith.addf %98, %13 : vector<2x8x8xf32>
    %cst_27 = arith.constant dense<0xFF800000> : vector<2x8xf32>
    %100 = vector.multi_reduction <maximumf>, %99, %cst_27 [2] : vector<2x8x8xf32> to vector<2x8xf32>
    %101 = vector.shape_cast %100 : vector<2x8xf32> to vector<2x8x1xf32>
    %102 = vector.broadcast %101 : vector<2x8x1xf32> to vector<2x8x8xf32>
    %103 = arith.subf %99, %102 : vector<2x8x8xf32>
    %104 = math.exp %103 : vector<2x8x8xf32>
    %cst_28 = arith.constant dense<0.000000e+00> : vector<2x8xf32>
    %105 = vector.multi_reduction <add>, %104, %cst_28 [2] : vector<2x8x8xf32> to vector<2x8xf32>
    %106 = vector.shape_cast %105 : vector<2x8xf32> to vector<2x8x1xf32>
    %107 = tpu.reciprocal %106 {approx = true} : vector<2x8x1xf32> -> vector<2x8x1xf32>
    %108 = vector.broadcast %107 : vector<2x8x1xf32> to vector<2x8x8xf32>
    %109 = arith.mulf %104, %108 : vector<2x8x8xf32>
    "tpu.trace_start"() <{level = 10 : i32, message = "bqk,bkd->bqd"}> : () -> ()
    %cst_29 = arith.constant dense<0.000000e+00> : vector<2x8x8xf32>
    %110 = tpu.matmul %109, %97, %cst_29 {dimension_numbers = #tpu.dot_dimension_numbers<[2], [1], [1], [2], [0, 0, 0, 1, 1, 2], [0], [0]>} : vector<2x8x8xf32>, vector<2x8x8xf32>, vector<2x8x8xf32> -> vector<2x8x8xf32>
    "tpu.trace_stop"() : () -> ()
    %111 = vector.shape_cast %110 : vector<2x8x8xf32> to vector<16x8xf32>
    %112 = tpu.concatenate %51, %71, %91, %111 in 1 : vector<16x8xf32>, vector<16x8xf32>, vector<16x8xf32>, vector<16x8xf32> -> vector<16x32xf32>
    %c0_30 = arith.constant 0 : index
    %c0_31 = arith.constant 0 : index
    %c0_32 = arith.constant 0 : index
    %113 = vector.load %arg5[%c0_30, %c0_31, %c0_32] : memref<2x32x32xf32, #tpu.memory_space<vmem>>, vector<1x32x32xf32>
    %114 = vector.shape_cast %113 : vector<1x32x32xf32> to vector<32x32xf32>
    %cst_33 = arith.constant dense<0.000000e+00> : vector<16x32xf32>
    %115 = tpu.matmul %112, %114, %cst_33 {dimension_numbers = #tpu.dot_dimension_numbers<[1], [0], [0], [1], [0, 0, 1, 1], [], []>} : vector<16x32xf32>, vector<32x32xf32>, vector<16x32xf32> -> vector<16x32xf32>
    %116 = vector.broadcast %17 : vector<1x32xf32> to vector<16x32xf32>
    %117 = arith.addf %115, %116 : vector<16x32xf32>
    %118 = arith.addf %9, %117 : vector<16x32xf32>
    %cst_34 = arith.constant dense<0.000000e+00> : vector<16xf32>
    %119 = vector.multi_reduction <add>, %118, %cst_34 [1] : vector<16x32xf32> to vector<16xf32>
    %120 = vector.shape_cast %119 : vector<16xf32> to vector<16x1xf32>
    %cst_35 = arith.constant 3.200000e+01 : f32
    %121 = vector.broadcast %cst_35 : f32 to vector<16x1xf32>
    %122 = arith.divf %120, %121 : vector<16x1xf32>
    %123 = vector.broadcast %122 : vector<16x1xf32> to vector<16x32xf32>
    %124 = arith.subf %118, %123 : vector<16x32xf32>
    %125 = arith.mulf %124, %124 : vector<16x32xf32>
    %cst_36 = arith.constant dense<0.000000e+00> : vector<16xf32>
    %126 = vector.multi_reduction <add>, %125, %cst_36 [1] : vector<16x32xf32> to vector<16xf32>
    %127 = vector.shape_cast %126 : vector<16xf32> to vector<16x1xf32>
    %cst_37 = arith.constant 3.200000e+01 : f32
    %128 = vector.broadcast %cst_37 : f32 to vector<16x1xf32>
    %129 = arith.divf %127, %128 : vector<16x1xf32>
    %130 = vector.broadcast %122 : vector<16x1xf32> to vector<16x32xf32>
    %131 = arith.subf %118, %130 : vector<16x32xf32>
    %cst_38 = arith.constant 9.99999974E-6 : f32
    %132 = vector.broadcast %cst_38 : f32 to vector<16x1xf32>
    %133 = arith.addf %129, %132 : vector<16x1xf32>
    %134 = math.rsqrt %133 : vector<16x1xf32>
    %135 = vector.broadcast %134 : vector<16x1xf32> to vector<16x32xf32>
    %136 = arith.mulf %131, %135 : vector<16x32xf32>
    %137 = vector.broadcast %18 : vector<1x32xf32> to vector<16x32xf32>
    %138 = arith.mulf %136, %137 : vector<16x32xf32>
    %139 = vector.broadcast %19 : vector<1x32xf32> to vector<16x32xf32>
    %140 = arith.addf %138, %139 : vector<16x32xf32>
    %c0_39 = arith.constant 0 : index
    %c0_40 = arith.constant 0 : index
    %c0_41 = arith.constant 0 : index
    %141 = vector.load %arg6[%c0_39, %c0_40, %c0_41] : memref<2x32x64xf32, #tpu.memory_space<vmem>>, vector<1x32x64xf32>
    %142 = vector.shape_cast %141 : vector<1x32x64xf32> to vector<32x64xf32>
    %cst_42 = arith.constant dense<0.000000e+00> : vector<16x64xf32>
    %143 = tpu.matmul %140, %142, %cst_42 {dimension_numbers = #tpu.dot_dimension_numbers<[1], [0], [0], [1], [0, 0, 1, 1], [], []>} : vector<16x32xf32>, vector<32x64xf32>, vector<16x64xf32> -> vector<16x64xf32>
    %144 = vector.broadcast %20 : vector<1x64xf32> to vector<16x64xf32>
    %145 = arith.addf %143, %144 : vector<16x64xf32>
    %cst_43 = arith.constant 0.000000e+00 : f32
    %146 = vector.broadcast %cst_43 : f32 to vector<16x64xf32>
    %147 = arith.maximumf %145, %146 : vector<16x64xf32>
    %c0_44 = arith.constant 0 : index
    %c0_45 = arith.constant 0 : index
    %c0_46 = arith.constant 0 : index
    %148 = vector.load %arg7[%c0_44, %c0_45, %c0_46] : memref<2x64x32xf32, #tpu.memory_space<vmem>>, vector<1x64x32xf32>
    %149 = vector.shape_cast %148 : vector<1x64x32xf32> to vector<64x32xf32>
    %cst_47 = arith.constant dense<0.000000e+00> : vector<16x32xf32>
    %150 = tpu.matmul %147, %149, %cst_47 {dimension_numbers = #tpu.dot_dimension_numbers<[1], [0], [0], [1], [0, 0, 1, 1], [], []>} : vector<16x64xf32>, vector<64x32xf32>, vector<16x32xf32> -> vector<16x32xf32>
    %151 = vector.broadcast %21 : vector<1x32xf32> to vector<16x32xf32>
    %152 = arith.addf %150, %151 : vector<16x32xf32>
    %153 = arith.addf %140, %152 : vector<16x32xf32>
    %cst_48 = arith.constant dense<0.000000e+00> : vector<16xf32>
    %154 = vector.multi_reduction <add>, %153, %cst_48 [1] : vector<16x32xf32> to vector<16xf32>
    %155 = vector.shape_cast %154 : vector<16xf32> to vector<16x1xf32>
    %cst_49 = arith.constant 3.200000e+01 : f32
    %156 = vector.broadcast %cst_49 : f32 to vector<16x1xf32>
    %157 = arith.divf %155, %156 : vector<16x1xf32>
    %158 = vector.broadcast %157 : vector<16x1xf32> to vector<16x32xf32>
    %159 = arith.subf %153, %158 : vector<16x32xf32>
    %160 = arith.mulf %159, %159 : vector<16x32xf32>
    %cst_50 = arith.constant dense<0.000000e+00> : vector<16xf32>
    %161 = vector.multi_reduction <add>, %160, %cst_50 [1] : vector<16x32xf32> to vector<16xf32>
    %162 = vector.shape_cast %161 : vector<16xf32> to vector<16x1xf32>
    %cst_51 = arith.constant 3.200000e+01 : f32
    %163 = vector.broadcast %cst_51 : f32 to vector<16x1xf32>
    %164 = arith.divf %162, %163 : vector<16x1xf32>
    %165 = vector.broadcast %157 : vector<16x1xf32> to vector<16x32xf32>
    %166 = arith.subf %153, %165 : vector<16x32xf32>
    %cst_52 = arith.constant 9.99999974E-6 : f32
    %167 = vector.broadcast %cst_52 : f32 to vector<16x1xf32>
    %168 = arith.addf %164, %167 : vector<16x1xf32>
    %169 = math.rsqrt %168 : vector<16x1xf32>
    %170 = vector.broadcast %169 : vector<16x1xf32> to vector<16x32xf32>
    %171 = arith.mulf %166, %170 : vector<16x32xf32>
    %172 = vector.broadcast %22 : vector<1x32xf32> to vector<16x32xf32>
    %173 = arith.mulf %171, %172 : vector<16x32xf32>
    %174 = vector.broadcast %23 : vector<1x32xf32> to vector<16x32xf32>
    %175 = arith.addf %173, %174 : vector<16x32xf32>
    %c1 = arith.constant 1 : index
    %c0_53 = arith.constant 0 : index
    %c0_54 = arith.constant 0 : index
    %176 = vector.load %arg8[%c1, %c0_53, %c0_54] : memref<2x8x128xf32, #tpu.memory_space<vmem>>, vector<1x8x128xf32>
    %177 = vector.shape_cast %176 : vector<1x8x128xf32> to vector<8x128xf32>
    %178 = vector.extract_strided_slice %177 {offsets = [0, 0], sizes = [1, 128], strides = [1, 1]} : vector<8x128xf32> to vector<1x128xf32>
    %179 = vector.extract_strided_slice %177 {offsets = [1, 0], sizes = [1, 32], strides = [1, 1]} : vector<8x128xf32> to vector<1x32xf32>
    %180 = vector.extract_strided_slice %177 {offsets = [2, 0], sizes = [1, 32], strides = [1, 1]} : vector<8x128xf32> to vector<1x32xf32>
    %181 = vector.extract_strided_slice %177 {offsets = [3, 0], sizes = [1, 32], strides = [1, 1]} : vector<8x128xf32> to vector<1x32xf32>
    %182 = vector.extract_strided_slice %177 {offsets = [4, 0], sizes = [1, 64], strides = [1, 1]} : vector<8x128xf32> to vector<1x64xf32>
    %183 = vector.extract_strided_slice %177 {offsets = [5, 0], sizes = [1, 32], strides = [1, 1]} : vector<8x128xf32> to vector<1x32xf32>
    %184 = vector.extract_strided_slice %177 {offsets = [6, 0], sizes = [1, 32], strides = [1, 1]} : vector<8x128xf32> to vector<1x32xf32>
    %185 = vector.extract_strided_slice %177 {offsets = [7, 0], sizes = [1, 32], strides = [1, 1]} : vector<8x128xf32> to vector<1x32xf32>
    %c1_55 = arith.constant 1 : index
    %c0_56 = arith.constant 0 : index
    %c0_57 = arith.constant 0 : index
    %186 = vector.load %arg4[%c1_55, %c0_56, %c0_57] : memref<2x32x128xf32, #tpu.memory_space<vmem>>, vector<1x32x128xf32>
    %187 = vector.shape_cast %186 : vector<1x32x128xf32> to vector<32x128xf32>
    %cst_58 = arith.constant dense<0.000000e+00> : vector<16x128xf32>
    %188 = tpu.matmul %175, %187, %cst_58 {dimension_numbers = #tpu.dot_dimension_numbers<[1], [0], [0], [1], [0, 0, 1, 1], [], []>} : vector<16x32xf32>, vector<32x128xf32>, vector<16x128xf32> -> vector<16x128xf32>
    %189 = vector.broadcast %178 : vector<1x128xf32> to vector<16x128xf32>
    %190 = arith.addf %188, %189 : vector<16x128xf32>
    %191 = vector.extract_strided_slice %190 {offsets = [0, 0], sizes = [16, 32], strides = [1, 1]} : vector<16x128xf32> to vector<16x32xf32>
    %192 = vector.extract_strided_slice %190 {offsets = [0, 32], sizes = [16, 32], strides = [1, 1]} : vector<16x128xf32> to vector<16x32xf32>
    %193 = vector.extract_strided_slice %190 {offsets = [0, 64], sizes = [16, 32], strides = [1, 1]} : vector<16x128xf32> to vector<16x32xf32>
    %194 = vector.extract_strided_slice %191 {offsets = [0, 0], sizes = [16, 8], strides = [1, 1]} : vector<16x32xf32> to vector<16x8xf32>
    %195 = vector.shape_cast %194 : vector<16x8xf32> to vector<2x8x8xf32>
    %196 = vector.extract_strided_slice %192 {offsets = [0, 0], sizes = [16, 8], strides = [1, 1]} : vector<16x32xf32> to vector<16x8xf32>
    %197 = vector.shape_cast %196 : vector<16x8xf32> to vector<2x8x8xf32>
    %198 = vector.extract_strided_slice %193 {offsets = [0, 0], sizes = [16, 8], strides = [1, 1]} : vector<16x32xf32> to vector<16x8xf32>
    %199 = vector.shape_cast %198 : vector<16x8xf32> to vector<2x8x8xf32>
    "tpu.trace_start"() <{level = 10 : i32, message = "bqd,bkd->bqk"}> : () -> ()
    %cst_59 = arith.constant dense<0.000000e+00> : vector<2x8x8xf32>
    %200 = tpu.matmul %195, %197, %cst_59 {dimension_numbers = #tpu.dot_dimension_numbers<[2], [2], [1], [1], [0, 0, 0, 1, 1, 1], [0], [0]>} : vector<2x8x8xf32>, vector<2x8x8xf32>, vector<2x8x8xf32> -> vector<2x8x8xf32>
    "tpu.trace_stop"() : () -> ()
    %201 = arith.addf %200, %13 : vector<2x8x8xf32>
    %cst_60 = arith.constant dense<0xFF800000> : vector<2x8xf32>
    %202 = vector.multi_reduction <maximumf>, %201, %cst_60 [2] : vector<2x8x8xf32> to vector<2x8xf32>
    %203 = vector.shape_cast %202 : vector<2x8xf32> to vector<2x8x1xf32>
    %204 = vector.broadcast %203 : vector<2x8x1xf32> to vector<2x8x8xf32>
    %205 = arith.subf %201, %204 : vector<2x8x8xf32>
    %206 = math.exp %205 : vector<2x8x8xf32>
    %cst_61 = arith.constant dense<0.000000e+00> : vector<2x8xf32>
    %207 = vector.multi_reduction <add>, %206, %cst_61 [2] : vector<2x8x8xf32> to vector<2x8xf32>
    %208 = vector.shape_cast %207 : vector<2x8xf32> to vector<2x8x1xf32>
    %209 = tpu.reciprocal %208 {approx = true} : vector<2x8x1xf32> -> vector<2x8x1xf32>
    %210 = vector.broadcast %209 : vector<2x8x1xf32> to vector<2x8x8xf32>
    %211 = arith.mulf %206, %210 : vector<2x8x8xf32>
    "tpu.trace_start"() <{level = 10 : i32, message = "bqk,bkd->bqd"}> : () -> ()
    %cst_62 = arith.constant dense<0.000000e+00> : vector<2x8x8xf32>
    %212 = tpu.matmul %211, %199, %cst_62 {dimension_numbers = #tpu.dot_dimension_numbers<[2], [1], [1], [2], [0, 0, 0, 1, 1, 2], [0], [0]>} : vector<2x8x8xf32>, vector<2x8x8xf32>, vector<2x8x8xf32> -> vector<2x8x8xf32>
    "tpu.trace_stop"() : () -> ()
    %213 = vector.shape_cast %212 : vector<2x8x8xf32> to vector<16x8xf32>
    %214 = vector.extract_strided_slice %191 {offsets = [0, 8], sizes = [16, 8], strides = [1, 1]} : vector<16x32xf32> to vector<16x8xf32>
    %215 = vector.shape_cast %214 : vector<16x8xf32> to vector<2x8x8xf32>
    %216 = vector.extract_strided_slice %192 {offsets = [0, 8], sizes = [16, 8], strides = [1, 1]} : vector<16x32xf32> to vector<16x8xf32>
    %217 = vector.shape_cast %216 : vector<16x8xf32> to vector<2x8x8xf32>
    %218 = vector.extract_strided_slice %193 {offsets = [0, 8], sizes = [16, 8], strides = [1, 1]} : vector<16x32xf32> to vector<16x8xf32>
    %219 = vector.shape_cast %218 : vector<16x8xf32> to vector<2x8x8xf32>
    "tpu.trace_start"() <{level = 10 : i32, message = "bqd,bkd->bqk"}> : () -> ()
    %cst_63 = arith.constant dense<0.000000e+00> : vector<2x8x8xf32>
    %220 = tpu.matmul %215, %217, %cst_63 {dimension_numbers = #tpu.dot_dimension_numbers<[2], [2], [1], [1], [0, 0, 0, 1, 1, 1], [0], [0]>} : vector<2x8x8xf32>, vector<2x8x8xf32>, vector<2x8x8xf32> -> vector<2x8x8xf32>
    "tpu.trace_stop"() : () -> ()
    %221 = arith.addf %220, %13 : vector<2x8x8xf32>
    %cst_64 = arith.constant dense<0xFF800000> : vector<2x8xf32>
    %222 = vector.multi_reduction <maximumf>, %221, %cst_64 [2] : vector<2x8x8xf32> to vector<2x8xf32>
    %223 = vector.shape_cast %222 : vector<2x8xf32> to vector<2x8x1xf32>
    %224 = vector.broadcast %223 : vector<2x8x1xf32> to vector<2x8x8xf32>
    %225 = arith.subf %221, %224 : vector<2x8x8xf32>
    %226 = math.exp %225 : vector<2x8x8xf32>
    %cst_65 = arith.constant dense<0.000000e+00> : vector<2x8xf32>
    %227 = vector.multi_reduction <add>, %226, %cst_65 [2] : vector<2x8x8xf32> to vector<2x8xf32>
    %228 = vector.shape_cast %227 : vector<2x8xf32> to vector<2x8x1xf32>
    %229 = tpu.reciprocal %228 {approx = true} : vector<2x8x1xf32> -> vector<2x8x1xf32>
    %230 = vector.broadcast %229 : vector<2x8x1xf32> to vector<2x8x8xf32>
    %231 = arith.mulf %226, %230 : vector<2x8x8xf32>
    "tpu.trace_start"() <{level = 10 : i32, message = "bqk,bkd->bqd"}> : () -> ()
    %cst_66 = arith.constant dense<0.000000e+00> : vector<2x8x8xf32>
    %232 = tpu.matmul %231, %219, %cst_66 {dimension_numbers = #tpu.dot_dimension_numbers<[2], [1], [1], [2], [0, 0, 0, 1, 1, 2], [0], [0]>} : vector<2x8x8xf32>, vector<2x8x8xf32>, vector<2x8x8xf32> -> vector<2x8x8xf32>
    "tpu.trace_stop"() : () -> ()
    %233 = vector.shape_cast %232 : vector<2x8x8xf32> to vector<16x8xf32>
    %234 = vector.extract_strided_slice %191 {offsets = [0, 16], sizes = [16, 8], strides = [1, 1]} : vector<16x32xf32> to vector<16x8xf32>
    %235 = vector.shape_cast %234 : vector<16x8xf32> to vector<2x8x8xf32>
    %236 = vector.extract_strided_slice %192 {offsets = [0, 16], sizes = [16, 8], strides = [1, 1]} : vector<16x32xf32> to vector<16x8xf32>
    %237 = vector.shape_cast %236 : vector<16x8xf32> to vector<2x8x8xf32>
    %238 = vector.extract_strided_slice %193 {offsets = [0, 16], sizes = [16, 8], strides = [1, 1]} : vector<16x32xf32> to vector<16x8xf32>
    %239 = vector.shape_cast %238 : vector<16x8xf32> to vector<2x8x8xf32>
    "tpu.trace_start"() <{level = 10 : i32, message = "bqd,bkd->bqk"}> : () -> ()
    %cst_67 = arith.constant dense<0.000000e+00> : vector<2x8x8xf32>
    %240 = tpu.matmul %235, %237, %cst_67 {dimension_numbers = #tpu.dot_dimension_numbers<[2], [2], [1], [1], [0, 0, 0, 1, 1, 1], [0], [0]>} : vector<2x8x8xf32>, vector<2x8x8xf32>, vector<2x8x8xf32> -> vector<2x8x8xf32>
    "tpu.trace_stop"() : () -> ()
    %241 = arith.addf %240, %13 : vector<2x8x8xf32>
    %cst_68 = arith.constant dense<0xFF800000> : vector<2x8xf32>
    %242 = vector.multi_reduction <maximumf>, %241, %cst_68 [2] : vector<2x8x8xf32> to vector<2x8xf32>
    %243 = vector.shape_cast %242 : vector<2x8xf32> to vector<2x8x1xf32>
    %244 = vector.broadcast %243 : vector<2x8x1xf32> to vector<2x8x8xf32>
    %245 = arith.subf %241, %244 : vector<2x8x8xf32>
    %246 = math.exp %245 : vector<2x8x8xf32>
    %cst_69 = arith.constant dense<0.000000e+00> : vector<2x8xf32>
    %247 = vector.multi_reduction <add>, %246, %cst_69 [2] : vector<2x8x8xf32> to vector<2x8xf32>
    %248 = vector.shape_cast %247 : vector<2x8xf32> to vector<2x8x1xf32>
    %249 = tpu.reciprocal %248 {approx = true} : vector<2x8x1xf32> -> vector<2x8x1xf32>
    %250 = vector.broadcast %249 : vector<2x8x1xf32> to vector<2x8x8xf32>
    %251 = arith.mulf %246, %250 : vector<2x8x8xf32>
    "tpu.trace_start"() <{level = 10 : i32, message = "bqk,bkd->bqd"}> : () -> ()
    %cst_70 = arith.constant dense<0.000000e+00> : vector<2x8x8xf32>
    %252 = tpu.matmul %251, %239, %cst_70 {dimension_numbers = #tpu.dot_dimension_numbers<[2], [1], [1], [2], [0, 0, 0, 1, 1, 2], [0], [0]>} : vector<2x8x8xf32>, vector<2x8x8xf32>, vector<2x8x8xf32> -> vector<2x8x8xf32>
    "tpu.trace_stop"() : () -> ()
    %253 = vector.shape_cast %252 : vector<2x8x8xf32> to vector<16x8xf32>
    %254 = vector.extract_strided_slice %191 {offsets = [0, 24], sizes = [16, 8], strides = [1, 1]} : vector<16x32xf32> to vector<16x8xf32>
    %255 = vector.shape_cast %254 : vector<16x8xf32> to vector<2x8x8xf32>
    %256 = vector.extract_strided_slice %192 {offsets = [0, 24], sizes = [16, 8], strides = [1, 1]} : vector<16x32xf32> to vector<16x8xf32>
    %257 = vector.shape_cast %256 : vector<16x8xf32> to vector<2x8x8xf32>
    %258 = vector.extract_strided_slice %193 {offsets = [0, 24], sizes = [16, 8], strides = [1, 1]} : vector<16x32xf32> to vector<16x8xf32>
    %259 = vector.shape_cast %258 : vector<16x8xf32> to vector<2x8x8xf32>
    "tpu.trace_start"() <{level = 10 : i32, message = "bqd,bkd->bqk"}> : () -> ()
    %cst_71 = arith.constant dense<0.000000e+00> : vector<2x8x8xf32>
    %260 = tpu.matmul %255, %257, %cst_71 {dimension_numbers = #tpu.dot_dimension_numbers<[2], [2], [1], [1], [0, 0, 0, 1, 1, 1], [0], [0]>} : vector<2x8x8xf32>, vector<2x8x8xf32>, vector<2x8x8xf32> -> vector<2x8x8xf32>
    "tpu.trace_stop"() : () -> ()
    %261 = arith.addf %260, %13 : vector<2x8x8xf32>
    %cst_72 = arith.constant dense<0xFF800000> : vector<2x8xf32>
    %262 = vector.multi_reduction <maximumf>, %261, %cst_72 [2] : vector<2x8x8xf32> to vector<2x8xf32>
    %263 = vector.shape_cast %262 : vector<2x8xf32> to vector<2x8x1xf32>
    %264 = vector.broadcast %263 : vector<2x8x1xf32> to vector<2x8x8xf32>
    %265 = arith.subf %261, %264 : vector<2x8x8xf32>
    %266 = math.exp %265 : vector<2x8x8xf32>
    %cst_73 = arith.constant dense<0.000000e+00> : vector<2x8xf32>
    %267 = vector.multi_reduction <add>, %266, %cst_73 [2] : vector<2x8x8xf32> to vector<2x8xf32>
    %268 = vector.shape_cast %267 : vector<2x8xf32> to vector<2x8x1xf32>
    %269 = tpu.reciprocal %268 {approx = true} : vector<2x8x1xf32> -> vector<2x8x1xf32>
    %270 = vector.broadcast %269 : vector<2x8x1xf32> to vector<2x8x8xf32>
    %271 = arith.mulf %266, %270 : vector<2x8x8xf32>
    "tpu.trace_start"() <{level = 10 : i32, message = "bqk,bkd->bqd"}> : () -> ()
    %cst_74 = arith.constant dense<0.000000e+00> : vector<2x8x8xf32>
    %272 = tpu.matmul %271, %259, %cst_74 {dimension_numbers = #tpu.dot_dimension_numbers<[2], [1], [1], [2], [0, 0, 0, 1, 1, 2], [0], [0]>} : vector<2x8x8xf32>, vector<2x8x8xf32>, vector<2x8x8xf32> -> vector<2x8x8xf32>
    "tpu.trace_stop"() : () -> ()
    %273 = vector.shape_cast %272 : vector<2x8x8xf32> to vector<16x8xf32>
    %274 = tpu.concatenate %213, %233, %253, %273 in 1 : vector<16x8xf32>, vector<16x8xf32>, vector<16x8xf32>, vector<16x8xf32> -> vector<16x32xf32>
    %c1_75 = arith.constant 1 : index
    %c0_76 = arith.constant 0 : index
    %c0_77 = arith.constant 0 : index
    %275 = vector.load %arg5[%c1_75, %c0_76, %c0_77] : memref<2x32x32xf32, #tpu.memory_space<vmem>>, vector<1x32x32xf32>
    %276 = vector.shape_cast %275 : vector<1x32x32xf32> to vector<32x32xf32>
    %cst_78 = arith.constant dense<0.000000e+00> : vector<16x32xf32>
    %277 = tpu.matmul %274, %276, %cst_78 {dimension_numbers = #tpu.dot_dimension_numbers<[1], [0], [0], [1], [0, 0, 1, 1], [], []>} : vector<16x32xf32>, vector<32x32xf32>, vector<16x32xf32> -> vector<16x32xf32>
    %278 = vector.broadcast %179 : vector<1x32xf32> to vector<16x32xf32>
    %279 = arith.addf %277, %278 : vector<16x32xf32>
    %280 = arith.addf %175, %279 : vector<16x32xf32>
    %cst_79 = arith.constant dense<0.000000e+00> : vector<16xf32>
    %281 = vector.multi_reduction <add>, %280, %cst_79 [1] : vector<16x32xf32> to vector<16xf32>
    %282 = vector.shape_cast %281 : vector<16xf32> to vector<16x1xf32>
    %cst_80 = arith.constant 3.200000e+01 : f32
    %283 = vector.broadcast %cst_80 : f32 to vector<16x1xf32>
    %284 = arith.divf %282, %283 : vector<16x1xf32>
    %285 = vector.broadcast %284 : vector<16x1xf32> to vector<16x32xf32>
    %286 = arith.subf %280, %285 : vector<16x32xf32>
    %287 = arith.mulf %286, %286 : vector<16x32xf32>
    %cst_81 = arith.constant dense<0.000000e+00> : vector<16xf32>
    %288 = vector.multi_reduction <add>, %287, %cst_81 [1] : vector<16x32xf32> to vector<16xf32>
    %289 = vector.shape_cast %288 : vector<16xf32> to vector<16x1xf32>
    %cst_82 = arith.constant 3.200000e+01 : f32
    %290 = vector.broadcast %cst_82 : f32 to vector<16x1xf32>
    %291 = arith.divf %289, %290 : vector<16x1xf32>
    %292 = vector.broadcast %284 : vector<16x1xf32> to vector<16x32xf32>
    %293 = arith.subf %280, %292 : vector<16x32xf32>
    %cst_83 = arith.constant 9.99999974E-6 : f32
    %294 = vector.broadcast %cst_83 : f32 to vector<16x1xf32>
    %295 = arith.addf %291, %294 : vector<16x1xf32>
    %296 = math.rsqrt %295 : vector<16x1xf32>
    %297 = vector.broadcast %296 : vector<16x1xf32> to vector<16x32xf32>
    %298 = arith.mulf %293, %297 : vector<16x32xf32>
    %299 = vector.broadcast %180 : vector<1x32xf32> to vector<16x32xf32>
    %300 = arith.mulf %298, %299 : vector<16x32xf32>
    %301 = vector.broadcast %181 : vector<1x32xf32> to vector<16x32xf32>
    %302 = arith.addf %300, %301 : vector<16x32xf32>
    %c1_84 = arith.constant 1 : index
    %c0_85 = arith.constant 0 : index
    %c0_86 = arith.constant 0 : index
    %303 = vector.load %arg6[%c1_84, %c0_85, %c0_86] : memref<2x32x64xf32, #tpu.memory_space<vmem>>, vector<1x32x64xf32>
    %304 = vector.shape_cast %303 : vector<1x32x64xf32> to vector<32x64xf32>
    %cst_87 = arith.constant dense<0.000000e+00> : vector<16x64xf32>
    %305 = tpu.matmul %302, %304, %cst_87 {dimension_numbers = #tpu.dot_dimension_numbers<[1], [0], [0], [1], [0, 0, 1, 1], [], []>} : vector<16x32xf32>, vector<32x64xf32>, vector<16x64xf32> -> vector<16x64xf32>
    %306 = vector.broadcast %182 : vector<1x64xf32> to vector<16x64xf32>
    %307 = arith.addf %305, %306 : vector<16x64xf32>
    %cst_88 = arith.constant 0.000000e+00 : f32
    %308 = vector.broadcast %cst_88 : f32 to vector<16x64xf32>
    %309 = arith.maximumf %307, %308 : vector<16x64xf32>
    %c1_89 = arith.constant 1 : index
    %c0_90 = arith.constant 0 : index
    %c0_91 = arith.constant 0 : index
    %310 = vector.load %arg7[%c1_89, %c0_90, %c0_91] : memref<2x64x32xf32, #tpu.memory_space<vmem>>, vector<1x64x32xf32>
    %311 = vector.shape_cast %310 : vector<1x64x32xf32> to vector<64x32xf32>
    %cst_92 = arith.constant dense<0.000000e+00> : vector<16x32xf32>
    %312 = tpu.matmul %309, %311, %cst_92 {dimension_numbers = #tpu.dot_dimension_numbers<[1], [0], [0], [1], [0, 0, 1, 1], [], []>} : vector<16x64xf32>, vector<64x32xf32>, vector<16x32xf32> -> vector<16x32xf32>
    %313 = vector.broadcast %183 : vector<1x32xf32> to vector<16x32xf32>
    %314 = arith.addf %312, %313 : vector<16x32xf32>
    %315 = arith.addf %302, %314 : vector<16x32xf32>
    %cst_93 = arith.constant dense<0.000000e+00> : vector<16xf32>
    %316 = vector.multi_reduction <add>, %315, %cst_93 [1] : vector<16x32xf32> to vector<16xf32>
    %317 = vector.shape_cast %316 : vector<16xf32> to vector<16x1xf32>
    %cst_94 = arith.constant 3.200000e+01 : f32
    %318 = vector.broadcast %cst_94 : f32 to vector<16x1xf32>
    %319 = arith.divf %317, %318 : vector<16x1xf32>
    %320 = vector.broadcast %319 : vector<16x1xf32> to vector<16x32xf32>
    %321 = arith.subf %315, %320 : vector<16x32xf32>
    %322 = arith.mulf %321, %321 : vector<16x32xf32>
    %cst_95 = arith.constant dense<0.000000e+00> : vector<16xf32>
    %323 = vector.multi_reduction <add>, %322, %cst_95 [1] : vector<16x32xf32> to vector<16xf32>
    %324 = vector.shape_cast %323 : vector<16xf32> to vector<16x1xf32>
    %cst_96 = arith.constant 3.200000e+01 : f32
    %325 = vector.broadcast %cst_96 : f32 to vector<16x1xf32>
    %326 = arith.divf %324, %325 : vector<16x1xf32>
    %327 = vector.broadcast %319 : vector<16x1xf32> to vector<16x32xf32>
    %328 = arith.subf %315, %327 : vector<16x32xf32>
    %cst_97 = arith.constant 9.99999974E-6 : f32
    %329 = vector.broadcast %cst_97 : f32 to vector<16x1xf32>
    %330 = arith.addf %326, %329 : vector<16x1xf32>
    %331 = math.rsqrt %330 : vector<16x1xf32>
    %332 = vector.broadcast %331 : vector<16x1xf32> to vector<16x32xf32>
    %333 = arith.mulf %328, %332 : vector<16x32xf32>
    %334 = vector.broadcast %184 : vector<1x32xf32> to vector<16x32xf32>
    %335 = arith.mulf %333, %334 : vector<16x32xf32>
    %336 = vector.broadcast %185 : vector<1x32xf32> to vector<16x32xf32>
    %337 = arith.addf %335, %336 : vector<16x32xf32>
    %c0_98 = arith.constant 0 : index
    %c0_99 = arith.constant 0 : index
    %338 = vector.load %arg9[%c0_98, %c0_99] : memref<32x128xf32, #tpu.memory_space<vmem>>, vector<32x128xf32>
    %cst_100 = arith.constant dense<0.000000e+00> : vector<16x128xf32>
    %339 = tpu.matmul %337, %338, %cst_100 {dimension_numbers = #tpu.dot_dimension_numbers<[1], [0], [0], [1], [0, 0, 1, 1], [], []>} : vector<16x32xf32>, vector<32x128xf32>, vector<16x128xf32> -> vector<16x128xf32>
    %c0_101 = arith.constant 0 : index
    %c0_102 = arith.constant 0 : index
    %340 = vector.load %arg10[%c0_101, %c0_102] : memref<1x128xf32, #tpu.memory_space<vmem>>, vector<1x128xf32>
    %341 = vector.broadcast %340 : vector<1x128xf32> to vector<16x128xf32>
    %342 = arith.addf %339, %341 : vector<16x128xf32>
    %c0_103 = arith.constant 0 : index
    %c0_104 = arith.constant 0 : index
    %343 = vector.load %arg11[%c0_103, %c0_104] : memref<16x128xf32, #tpu.memory_space<vmem>>, vector<16x128xf32>
    tpu.vector_store %arg11[%c0_103, %c0_104], %342 {strides = array<i32>} : memref<16x128xf32, #tpu.memory_space<vmem>>, vector<16x128xf32>,
    return
  }
}

</mosaic_0001>

<bundles_post_ra>
// kernel: transformer_forward.1
= control target key start
LH: loop header
LB: loop body
LE: loop exit
PB: predicated region body
PF: predicated region fallthrough
CT: control target
= control target key end

     0   :  { %v4485_v0 = vmov 0   ;;  %v40_v20 = vlaneseq  ;;  %v4486_v23 = vmov 1.0   ;;  %vm157_vm2 = vcmask 261120   ;;  %s4489_s25 = smov 96   ;;  %s4490_s28 = smov 64   ;;  %s5232_s0 = inlined_call_operand.vmem [shape: s32[16,1], index: 0, kind: input, shape index: {}]   ;;  %s5233_s1 = inlined_call_operand.vmem [shape: f32[128,32], index: 1, kind: input, shape index: {}]   ;;  %s5234_s4 = inlined_call_operand.vmem [shape: f32[2,32,128], index: 4, kind: input, shape index: {}]   ;;  %s5235_s2 = inlined_call_operand.vmem [shape: f32[16,32], index: 2, kind: input, shape index: {}]   ;;  %s5236_s8 = inlined_call_operand.vmem [shape: f32[2,8,128], index: 8, kind: input, shape index: {}]   ;;  %s5237_s3 = inlined_call_operand.vmem [shape: f32[8,8], index: 3, kind: input, shape index: {}]   ;;  %s5238_s5 = inlined_call_operand.vmem [shape: f32[2,32,32], index: 5, kind: input, shape index: {}]   ;;  %s5239_s6 = inlined_call_operand.vmem [shape: f32[2,32,64], index: 6, kind: input, shape index: {}]   ;;  %s5240_s7 = inlined_call_operand.vmem [shape: f32[2,64,32], index: 7, kind: input, shape index: {}]   ;;  %s5241_s9 = inlined_call_operand.vmem [shape: f32[32,128], index: 9, kind: input, shape index: {}]   ;;  %s5242_s10 = inlined_call_operand.vmem [shape: f32[1,128], index: 10, kind: input, shape index: {}]   ;;  %s5243_s11 = inlined_call_operand.vmem [shape: f32[16,128], index: 11, kind: output, shape index: {}]  }
   0x1   :  { %4403 = vset.pattern.permute.xlu0 %v4485_v0  ;;  %v38_v1 = vld [vmem:[%s5232_s0] sm:$0xff]  ;;  %v69_v2 = vld [vmem:[%s5233_s1 + $0x78] sm:$0xff]  ;;  %v68_v3 = vld [vmem:[%s5233_s1 + $0x70] sm:$0xff]  ;;  %v4487_v34 = vmov 0.0   ;;  %vm4488_vm3 = vmmov 0   ;;  %vm242_vm4 = vcmask 64512  }
   0x2   :  { %43 = vperm.xlu0 %4403, %v38_v1   ;;  %4075 = vmatprep.subr.mxu0 %v69_v2  ;;  %v39_v4 = vld [vmem:[%s5232_s0 + $0x8] sm:$0xff]  ;;  %v66_v6 = vld [vmem:[%s5233_s1 + $0x60] sm:$0xff]  ;;  %v65_v7 = vld [vmem:[%s5233_s1 + $0x58] sm:$0xff]  ;;  %v41_v21 = vand.u32 127, %v40_v20  ;;  %v4645_v35 = vshrl.u32 %v40_v20, 7  ;;  %s4491_s29 = smov 88  }
   0x3   :  { %4076 = vmatpush3.msra.mxu0 %v69_v2  ;;  %v67_v5 = vld [vmem:[%s5233_s1 + $0x68] sm:$0xff]  ;;  %v152_v8 = vld [vmem:[%s5234_s4 + $0x18] sm:$0xff]  ;;  %v64_v9 = vld [vmem:[%s5233_s1 + $0x50] sm:$0xff]  ;;  %s4492_s30 = smov 120   ;;  %s4493_s12 = smov 56   ;;  %vm1587_vm5 = vcmask 195584  }
   0x4   :  { %4077 = vmatprep.subr.mxu0 %v68_v3  ;;  %4110 = vmatprep.subr.mxu1 %v152_v8  ;;  %v63_v10 = vld [vmem:[%s5233_s1 + $0x48] sm:$0xff]  ;;  %v62_v11 = vld [vmem:[%s5233_s1 + $0x40] sm:$0xff]  ;;  %v61_v12 = vld [vmem:[%s5233_s1 + $0x38] sm:$0xff]  ;;  %v155_v36 = vsub.s32 0, %v4645_v35  ;;  %s4494_s0 = smov 80   ;;  %s4495_s13 = smov 112  }
   0x5   :  { %4078 = vmatpush3.msra.mxu0 %v68_v3  ;;  %4111 = vmatpush3.msra.mxu1 %v152_v8  ;;  %v60_v13 = vld [vmem:[%s5233_s1 + $0x30] sm:$0xff]  ;;  %v59_v14 = vld [vmem:[%s5233_s1 + $0x28] sm:$0xff]  ;;  %v58_v15 = vld [vmem:[%s5233_s1 + $0x20] sm:$0xff]  ;;  %s4496_s14 = smov 48   ;;  %s4497_s15 = smov 72   ;;  %vm1584_vm6 = vcmask 130048  }
   0x6   :  { %46 = vperm.xlu0 %4403, %v39_v4   ;;  %4079 = vmatprep.subr.mxu0 %v67_v5  ;;  %v57_v16 = vld [vmem:[%s5233_s1 + $0x18] sm:$0xff]  ;;  %v56_v17 = vld [vmem:[%s5233_s1 + $0x10] sm:$0xff]  ;;  %v55_v18 = vld [vmem:[%s5233_s1 + $0x8] sm:$0xff]  ;;  %s4498_s16 = smov 104   ;;  %s4500_s17 = smov 8   ;;  %vm1823_vm7 = vcmask 523264  }
   0x7   :  { %4080 = vmatpush3.msra.mxu0 %v67_v5  ;;  %v54_v19 = vld [vmem:[%s5233_s1] sm:$0xff]  ;;  %v151_v25 = vld [vmem:[%s5234_s4 + $0x10] sm:$0xff]  ;;  %v150_v26 = vld [vmem:[%s5234_s4 + $0x8] sm:$0xff]  ;;  %s4499_s1 = smov 40   ;;  %s4501_s18 = smov 16  }
   0x8   :  { %4081 = vmatprep.subr.mxu0 %v66_v6  ;;  %4112 = vmatprep.subr.mxu1 %v151_v25  ;;  %v149_v27 = vld [vmem:[%s5234_s4] sm:$0xff]  ;;  %v71_v30 = vld [vmem:[%s5235_s2 + $0x8] sm:$0xff]  ;;  %s4502_s27 = smov 24  }
   0x9   :  { %4082 = vmatpush3.msra.mxu0 %v66_v6  ;;  %4113 = vmatpush3.msra.mxu1 %v151_v25  ;;  %v70_v29 = vld [vmem:[%s5235_s2] sm:$0xff] }
   0xa   :  { %4083 = vmatprep.subr.mxu0 %v65_v7  ;;  %4114 = vmatprep.subr.mxu1 %v150_v26  ;;  %v4655_v37 = vld [vmem:[%s5236_s8] sm:$0xff] }
   0xb   :  { %4084 = vmatpush3.msra.mxu0 %v65_v7  ;;  %4115 = vmatpush3.msra.mxu1 %v150_v26  ;;  %v156_v39 = vrot.slane %v4655_v37, %v155_v36  ;;  %v4683_v45 = vld [vmem:[%s5237_s3] sm:$0xff] }
   0xc   :  { %4085 = vmatprep.subr.mxu0 %v64_v9  ;;  %4116 = vmatprep.subr.mxu1 %v149_v27 }
   0xd   :  { %4086 = vmatpush3.msra.mxu0 %v64_v9  ;;  %4117 = vmatpush3.msra.mxu1 %v149_v27 }
   0xe   :  { %4087 = vmatprep.subr.mxu0 %v63_v10  ;;  %4121 = vmatprep.subr.mxu1 %v4487_v34 }
   0xf   :  { %4088 = vmatpush3.msra.mxu0 %v63_v10 }
  0x10   :  { %4089 = vmatprep.subr.mxu0 %v62_v11 }
  0x11   :  { %4090 = vmatpush3.msra.mxu0 %v62_v11 }
  0x12   :  { %4091 = vmatprep.subr.mxu0 %v61_v12 }
  0x13   :  { %4092 = vmatpush3.msra.mxu0 %v61_v12 }
  0x14   :  { %4093 = vmatprep.subr.mxu0 %v60_v13 }
  0x15   :  { %4094 = vmatpush3.msra.mxu0 %v60_v13 }
  0x16   :  { %4095 = vmatprep.subr.mxu0 %v59_v14 }
  0x17   :  { %4096 = vmatpush3.msra.mxu0 %v59_v14 }
  0x18   :  { %4097 = vmatprep.subr.mxu0 %v58_v15 }
  0x19   :  { %4098 = vmatpush3.msra.mxu0 %v58_v15 }
  0x1a   :  { %4099 = vmatprep.subr.mxu0 %v57_v16 }
  0x1b   :  { %4100 = vmatpush3.msra.mxu0 %v57_v16 }
  0x1c   :  { %4101 = vmatprep.subr.mxu0 %v56_v17 }
  0x1d   :  { %4102 = vmatpush3.msra.mxu0 %v56_v17 }
  0x1e   :  { %4103 = vmatprep.subr.mxu0 %v55_v18 }
  0x1f   :  { %4104 = vmatpush3.msra.mxu0 %v55_v18 }
  0x20   :  { %4105 = vmatprep.subr.mxu0 %v54_v19 }
  0x21   :  { %4106 = vmatpush3.msra.mxu0 %v54_v19 }
  0x22   :  { %4161 = vmatprep.subr.mxu0 %v4487_v34 }
  0x7d   :  { %v44_v22 = vpop.permute.xlu0 %43 }
  0x7e   :  { %vm48_vm0 = vcmp.eq.s32.totalorder %v41_v21, %v44_v22 }
  0x7f   :  { %4107 = vmatprep.mubr.msk.f32.mxu0 %vm48_vm0, %v4486_v23 }
  0x81   :  { %v47_v24 = vpop.permute.xlu0 %46 }
  0x82   :  { %vm49_vm1 = vcmp.eq.s32.totalorder %v41_v21, %v47_v24 }
  0x83   :  { %4108 = vmatmul.mubr.msk.f32.vlgmr.msra.gmra.mxu0 %vm49_vm1, %v4486_v23 }
  0x84   :  { %4163 = vmatprep.mubr.msk.f32.mxu0 %vm4488_vm3, %v4487_v34 }
 0x143   :  { %v4109_v28 = vpop.f32.mrf.mxu0 }
 0x144   :  { %v4637_v33 = vadd.f32 %v4109_v28, %v71_v30 }
 0x145   :  { %v138_v31 = vpop.f32.mrf.mxu0 }
 0x146   :  { %v4635_v32 = vadd.f32 %v138_v31, %v70_v29 }
 0x148   :  { %4118 = vmatprep.mubr.msk.f32.mxu1 %vm157_vm2, %v4635_v32 }
 0x149   :  { %4119 = vmatmul.mubr.msk.f32.vlgmr.msra.gmra.mxu1 %vm157_vm2, %v4637_v33 }
 0x14a   :  { %4123 = vmatprep.mubr.msk.f32.mxu1 %vm4488_vm3, %v4487_v34 }
 0x209   :  { %v4120_v38 = vpop.f32.mrf.mxu1 }
 0x20a   :  { %v4664_v42 = vadd.f32 %v4120_v38, %v156_v39 }
 0x20b   :  { %v230_v40 = vpop.f32.mrf.mxu1 }
 0x20c   :  { %v4660_v41 = vadd.f32 %v230_v40, %v156_v39 }
 0x20e   :  { %240 = vrot.lane.b32.xlu1 %v4660_v41, %s4489_s25 }
 0x212   :  { %318 = vrot.lane.b32.xlu1 %v4664_v42, %s4489_s25 }
 0x280   :  { %v241_v43 = vpop.permute.xlu1 %240 }
 0x281   :  { %4122 = vmatpush3.xpose.msk.msra.mxu1 %vm242_vm4, %v241_v43 }
 0x282   :  { %4126 = vmatprep.subr.mxu1 %v4487_v34 }
 0x284   :  { %4124 = vmatmul.mubr.msk.f32.vlgmr.msra.gmra.mxu1 %vm242_vm4, %v4660_v41  ;;  %v319_v44 = vpop.permute.xlu1 %318 }
 0x285   :  { %4127 = vmatpush3.xpose.msk.msra.mxu1 %vm242_vm4, %v319_v44  ;;  %4128 = vmatprep.mubr.msk.f32.mxu1 %vm4488_vm3, %v4487_v34 }
 0x286   :  { %4131 = vmatprep.subr.mxu1 %v4487_v34 }
 0x288   :  { %4129 = vmatmul.mubr.msk.f32.vlgmr.msra.gmra.mxu1 %vm242_vm4, %v4664_v42 }
 0x289   :  { %4133 = vmatprep.mubr.msk.f32.mxu1 %vm4488_vm3, %v4487_v34 }
 0x344   :  { %v313_v46 = vpop.f32.mrf.mxu1 }
 0x345   :  { %v314_v47 = vadd.f32 %v313_v46, %v4683_v45 }
 0x346   :  { %v4125_v48 = vpop.f32.mrf.mxu1 }
 0x347   :  { %v394_v49 = vsel %vm242_vm4, %v314_v47, -inf }
 0x348   :  { %395 = vmax.xlane.f32.xlu0 %v394_v49  ;;  %v390_v50 = vpop.f32.mrf.mxu1 }
 0x349   :  { %v391_v51 = vadd.f32 %v390_v50, %v4683_v45 }
 0x34a   :  { %v4130_v52 = vpop.f32.mrf.mxu1 }
 0x34b   :  { %v397_v53 = vsel %vm242_vm4, %v391_v51, -inf }
 0x34c   :  { %398 = vmax.xlane.f32.xlu1 %v397_v53 }
 0x35d   :  { %416 = vrot.lane.b32.xlu1 %v4660_v41, %s4490_s28 }
 0x361   :  { %570 = vrot.lane.b32.xlu1 %v4660_v41, %s4491_s29 }
 0x365   :  { %568 = vrot.lane.b32.xlu1 %v4660_v41, %s4492_s30 }
 0x369   :  { %646 = vrot.lane.b32.xlu1 %v4664_v42, %s4492_s30 }
 0x3d1   :  { %v396_v54 = vpop.xlane.xlu0 %395 }
 0x3d2   :  { %v400_v55 = vsub.f32 %v314_v47, %v396_v54 }
 0x3d4   :  { %v402_v56 = vmul.f32 1.442695, %v400_v55 }
 0x3d5   :  { %v399_v57 = vpop.xlane.xlu1 %398 }
 0x3d6   :  { %4404 = vpow2.f32 %v402_v56  ;;  %v401_v58 = vsub.f32 %v391_v51, %v399_v57 }
 0x3d8   :  { %v404_v59 = vmul.f32 1.442695, %v401_v58 }
 0x3d9   :  { %v417_v60 = vpop.permute.xlu1 %416 }
 0x3da   :  { %4406 = vpow2.f32 %v404_v59  ;;  %4132 = vmatpush3.msra.mxu1 %v417_v60 }
 0x3db   :  { %4136 = vmatprep.subr.mxu1 %v4487_v34 }
 0x3dd   :  { %v571_v5 = vpop.permute.xlu1 %570 }
 0x3e1   :  { %v569_v9 = vpop.permute.xlu1 %568 }
 0x3e3   :  { %v4405_v61 = vpop.eup %4404 }
 0x3e4   :  { %v406_v62 = vsel %vm242_vm4, %v4405_v61, 0.0 }
 0x3e5   :  { %407 = vadd.xlane.f32.xlu0 %v406_v62  ;;  %v647_v11 = vpop.permute.xlu1 %646 }
 0x3e7   :  { %v4407_v63 = vpop.eup %4406 }
 0x3e8   :  { %v409_v0 = vsel %vm242_vm4, %v4407_v63, 0.0 }
 0x3e9   :  { %410 = vadd.xlane.f32.xlu0 %v409_v0 }
 0x3ff   :  { %492 = vrot.lane.b32.xlu0 %v4664_v42, %s4490_s28 }
 0x403   :  { %648 = vrot.lane.b32.xlu0 %v4664_v42, %s4491_s29 }
 0x46e   :  { %v408_v1 = vpop.xlane.xlu0 %407 }
 0x46f   :  { %4408 = vrcp.f32 %v408_v1 }
 0x472   :  { %v411_v2 = vpop.xlane.xlu0 %410 }
 0x473   :  { %4410 = vrcp.f32 %v411_v2 }
 0x476   :  { %v493_v6 = vpop.permute.xlu0 %492 }
 0x47a   :  { %v649_v10 = vpop.permute.xlu0 %648 }
 0x47c   :  { %v4409_v3 = vpop.eup %4408 }
 0x47d   :  { %v414_v4 = vmul.f32 %v4409_v3, %v4405_v61 }
 0x47f   :  { %4134 = vmatmul.mubr.msk.f32.vlgmr.msra.gmra.mxu1 %vm242_vm4, %v414_v4 }
 0x480   :  { %v4411_v7 = vpop.eup %4410  ;;  %4137 = vmatpush3.msra.mxu1 %v493_v6  ;;  %4138 = vmatprep.mubr.msk.f32.mxu1 %vm4488_vm3, %v4487_v34 }
 0x481   :  { %4141 = vmatprep.subr.mxu1 %v4487_v34  ;;  %v415_v8 = vmul.f32 %v4411_v7, %v4407_v63 }
 0x483   :  { %4139 = vmatmul.mubr.msk.f32.vlgmr.msra.gmra.mxu1 %vm242_vm4, %v415_v8 }
 0x484   :  { %4142 = vmatpush3.xpose.msk.msra.mxu1 %vm242_vm4, %v571_v5  ;;  %4143 = vmatprep.mubr.msk.f32.mxu1 %vm4488_vm3, %v4487_v34 }
 0x485   :  { %4146 = vmatprep.subr.mxu1 %v4487_v34 }
 0x487   :  { %4144 = vmatmul.mubr.msk.f32.vlgmr.msra.gmra.mxu1 %vm242_vm4, %v569_v9 }
 0x488   :  { %4147 = vmatpush3.xpose.msk.msra.mxu1 %vm242_vm4, %v649_v10  ;;  %4148 = vmatprep.mubr.msk.f32.mxu1 %vm4488_vm3, %v4487_v34 }
 0x489   :  { %4151 = vmatprep.subr.mxu1 %v4487_v34 }
 0x48b   :  { %4149 = vmatmul.mubr.msk.f32.vlgmr.msra.gmra.mxu1 %vm242_vm4, %v647_v11 }
 0x48c   :  { %4153 = vmatprep.mubr.msk.f32.mxu1 %vm4488_vm3, %v4487_v34 }
 0x53f   :  { %v4721_v12 = vpop.f32.mrf.mxu1 }
 0x541   :  { %v4135_v13 = vpop.f32.mrf.mxu1 }
 0x543   :  { %v4723_v14 = vpop.f32.mrf.mxu1 }
 0x545   :  { %v4140_v15 = vpop.f32.mrf.mxu1 }
 0x547   :  { %v642_v16 = vpop.f32.mrf.mxu1 }
 0x548   :  { %v643_v17 = vadd.f32 %v642_v16, %v4683_v45 }
 0x549   :  { %v4145_v18 = vpop.f32.mrf.mxu1 }
 0x54a   :  { %v724_v19 = vsel %vm242_vm4, %v643_v17, -inf }
 0x54b   :  { %725 = vmax.xlane.f32.xlu0 %v724_v19  ;;  %v720_v20 = vpop.f32.mrf.mxu1 }
 0x54c   :  { %v721_v21 = vadd.f32 %v720_v20, %v4683_v45 }
 0x54d   :  { %v4150_v22 = vpop.f32.mrf.mxu1 }
 0x54e   :  { %v727_v23 = vsel %vm242_vm4, %v721_v21, -inf }
 0x54f   :  { %728 = vmax.xlane.f32.xlu1 %v727_v23 }
 0x560   :  { %746 = vrot.lane.b32.xlu1 %v4660_v41, %s4493_s12 }
 0x561   :  { %822 = vrot.lane.b32.xlu0 %v4664_v42, %s4493_s12 }
 0x564   :  { %900 = vrot.lane.b32.xlu1 %v4660_v41, %s4494_s0 }
 0x568   :  { %978 = vrot.lane.b32.xlu1 %v4664_v42, %s4494_s0 }
 0x56c   :  { %976 = vrot.lane.b32.xlu1 %v4664_v42, %s4495_s13 }
 0x5d4   :  { %v726_v24 = vpop.xlane.xlu0 %725 }
 0x5d5   :  { %v730_v25 = vsub.f32 %v643_v17, %v726_v24 }
 0x5d7   :  { %v732_v26 = vmul.f32 1.442695, %v730_v25 }
 0x5d8   :  { %v729_v27 = vpop.xlane.xlu1 %728  ;;  %v823_v44 = vpop.permute.xlu0 %822 }
 0x5d9   :  { %4412 = vpow2.f32 %v732_v26  ;;  %v731_v28 = vsub.f32 %v721_v21, %v729_v27 }
 0x5db   :  { %v734_v29 = vmul.f32 1.442695, %v731_v28 }
 0x5dc   :  { %v747_v30 = vpop.permute.xlu1 %746 }
 0x5dd   :  { %4414 = vpow2.f32 %v734_v29  ;;  %4152 = vmatpush3.msra.mxu1 %v747_v30 }
 0x5de   :  { %4156 = vmatprep.subr.mxu1 %v4487_v34 }
 0x5e0   :  { %v901_v31 = vpop.permute.xlu1 %900 }
 0x5e1   :  { %4162 = vmatpush3.xpose.msk.msra.mxu0 %vm242_vm4, %v901_v31 }
 0x5e2   :  { %4171 = vmatprep.subr.mxu0 %v4487_v34 }
 0x5e4   :  { %v979_v52 = vpop.permute.xlu1 %978 }
 0x5e6   :  { %v4413_v38 = vpop.eup %4412 }
 0x5e7   :  { %v736_v39 = vsel %vm242_vm4, %v4413_v38, 0.0 }
 0x5e8   :  { %737 = vadd.xlane.f32.xlu0 %v736_v39  ;;  %v977_v54 = vpop.permute.xlu1 %976 }
 0x5ea   :  { %v4415_v40 = vpop.eup %4414 }
 0x5eb   :  { %v739_v43 = vsel %vm242_vm4, %v4415_v40, 0.0 }
 0x5ec   :  { %740 = vadd.xlane.f32.xlu0 %v739_v43 }
 0x602   :  { %898 = vrot.lane.b32.xlu0 %v4660_v41, %s4495_s13 }
 0x671   :  { %v738_v46 = vpop.xlane.xlu0 %737 }
 0x672   :  { %4416 = vrcp.f32 %v738_v46 }
 0x675   :  { %v741_v47 = vpop.xlane.xlu0 %740 }
 0x676   :  { %4418 = vrcp.f32 %v741_v47 }
 0x679   :  { %v899_v48 = vpop.permute.xlu0 %898 }
 0x67a   :  { %4164 = vmatmul.mubr.msk.f32.vlgmr.msra.gmra.mxu0 %vm242_vm4, %v899_v48 }
 0x67b   :  { %4173 = vmatprep.mubr.msk.f32.mxu0 %vm4488_vm3, %v4487_v34 }
 0x67f   :  { %v4417_v49 = vpop.eup %4416 }
 0x680   :  { %v744_v50 = vmul.f32 %v4417_v49, %v4413_v38 }
 0x682   :  { %4154 = vmatmul.mubr.msk.f32.vlgmr.msra.gmra.mxu1 %vm242_vm4, %v744_v50 }
 0x683   :  { %v4419_v51 = vpop.eup %4418  ;;  %4157 = vmatpush3.msra.mxu1 %v823_v44  ;;  %4158 = vmatprep.mubr.msk.f32.mxu1 %vm4488_vm3, %v4487_v34 }
 0x684   :  { %4166 = vmatprep.subr.mxu1 %v4487_v34  ;;  %v745_v53 = vmul.f32 %v4419_v51, %v4415_v40 }
 0x686   :  { %4159 = vmatmul.mubr.msk.f32.vlgmr.msra.gmra.mxu1 %vm242_vm4, %v745_v53 }
 0x687   :  { %4167 = vmatpush3.xpose.msk.msra.mxu1 %vm242_vm4, %v979_v52  ;;  %4168 = vmatprep.mubr.msk.f32.mxu1 %vm4488_vm3, %v4487_v34 }
 0x688   :  { %4176 = vmatprep.subr.mxu1 %v4487_v34 }
 0x68a   :  { %4169 = vmatmul.mubr.msk.f32.vlgmr.msra.gmra.mxu1 %vm242_vm4, %v977_v54 }
 0x68b   :  { %4178 = vmatprep.mubr.msk.f32.mxu1 %vm4488_vm3, %v4487_v34 }
 0x73a   :  { %v972_v55 = vpop.f32.mrf.mxu0 }
 0x73b   :  { %v973_v56 = vadd.f32 %v972_v55, %v4683_v45 }
 0x73c   :  { %v4165_v57 = vpop.f32.mrf.mxu0 }
 0x73d   :  { %v1054_v58 = vsel %vm242_vm4, %v973_v56, -inf }
 0x73e   :  { %1055 = vmax.xlane.f32.xlu0 %v1054_v58 }
 0x742   :  { %v4763_v59 = vpop.f32.mrf.mxu1 }
 0x744   :  { %v4155_v60 = vpop.f32.mrf.mxu1 }
 0x746   :  { %v4765_v61 = vpop.f32.mrf.mxu1 }
 0x748   :  { %v4160_v62 = vpop.f32.mrf.mxu1 }
 0x74a   :  { %v1050_v63 = vpop.f32.mrf.mxu1 }
 0x74b   :  { %v1051_v0 = vadd.f32 %v1050_v63, %v4683_v45 }
 0x74c   :  { %v4170_v1 = vpop.f32.mrf.mxu1 }
 0x74d   :  { %v1057_v2 = vsel %vm242_vm4, %v1051_v0, -inf  ;;  %v1592_v1 = vld [vmem:[%s5238_s5 + $0x10] sm:$0xff] }
 0x74e   :  { %1058 = vmax.xlane.f32.xlu1 %v1057_v2  ;;  %v1591_v2 = vld [vmem:[%s5238_s5 + $0x8] sm:$0xff] }
 0x75f   :  { %1076 = vrot.lane.b32.xlu1 %v4660_v41, %s4496_s14 }
 0x763   :  { %1230 = vrot.lane.b32.xlu1 %v4660_v41, %s4497_s15 }
 0x767   :  { %1308 = vrot.lane.b32.xlu1 %v4664_v42, %s4497_s15 }
 0x76b   :  { %1306 = vrot.lane.b32.xlu1 %v4664_v42, %s4498_s16 }
 0x7c7   :  { %v1056_v3 = vpop.xlane.xlu0 %1055 }
 0x7c8   :  { %v1060_v4 = vsub.f32 %v973_v56, %v1056_v3  ;;  %v1590_v3 = vld [vmem:[%s5238_s5] sm:$0xff] }
 0x7ca   :  { %v1062_v5 = vmul.f32 1.442695, %v1060_v4 }
 0x7cc   :  { %4420 = vpow2.f32 %v1062_v5 }
 0x7d7   :  { %v1059_v6 = vpop.xlane.xlu1 %1058 }
 0x7d8   :  { %v1061_v10 = vsub.f32 %v1051_v0, %v1059_v6 }
 0x7d9   :  { %v4421_v7 = vpop.eup %4420 }
 0x7da   :  { %v1066_v8 = vsel %vm242_vm4, %v4421_v7, 0.0  ;;  %v1064_v11 = vmul.f32 1.442695, %v1061_v10 }
 0x7db   :  { %1067 = vadd.xlane.f32.xlu0 %v1066_v8  ;;  %v1077_v9 = vpop.permute.xlu1 %1076 }
 0x7dc   :  { %4172 = vmatpush3.msra.mxu0 %v1077_v9  ;;  %4422 = vpow2.f32 %v1064_v11 }
 0x7dd   :  { %4181 = vmatprep.subr.mxu0 %v4487_v34 }
 0x7df   :  { %v1231_v20 = vpop.permute.xlu1 %1230 }
 0x7e3   :  { %v1309_v24 = vpop.permute.xlu1 %1308 }
 0x7e7   :  { %v1307_v26 = vpop.permute.xlu1 %1306 }
 0x7e9   :  { %v4423_v13 = vpop.eup %4422 }
 0x7ea   :  { %v1069_v15 = vsel %vm242_vm4, %v4423_v13, 0.0 }
 0x7f1   :  { %1152 = vrot.lane.b32.xlu0 %v4664_v42, %s4496_s14 }
 0x810   :  { %1070 = vadd.xlane.f32.xlu0 %v1069_v15 }
 0x826   :  { %1228 = vrot.lane.b32.xlu0 %v4660_v41, %s4498_s16 }
 0x864   :  { %v1068_v16 = vpop.xlane.xlu0 %1067 }
 0x865   :  { %4424 = vrcp.f32 %v1068_v16 }
 0x868   :  { %v1153_v17 = vpop.permute.xlu0 %1152 }
 0x869   :  { %4177 = vmatpush3.msra.mxu1 %v1153_v17 }
 0x86a   :  { %4186 = vmatprep.subr.mxu1 %v4487_v34 }
 0x872   :  { %v4425_v18 = vpop.eup %4424 }
 0x873   :  { %v1074_v19 = vmul.f32 %v4425_v18, %v4421_v7 }
 0x875   :  { %4174 = vmatmul.mubr.msk.f32.vlgmr.msra.gmra.mxu0 %vm242_vm4, %v1074_v19 }
 0x876   :  { %4182 = vmatpush3.xpose.msk.msra.mxu0 %vm242_vm4, %v1231_v20  ;;  %4183 = vmatprep.mubr.msk.f32.mxu0 %vm4488_vm3, %v4487_v34 }
 0x877   :  { %4191 = vmatprep.subr.mxu0 %v4487_v34 }
 0x899   :  { %v1071_v21 = vpop.xlane.xlu0 %1070 }
 0x89a   :  { %4426 = vrcp.f32 %v1071_v21 }
 0x89d   :  { %v1229_v22 = vpop.permute.xlu0 %1228 }
 0x89e   :  { %4184 = vmatmul.mubr.msk.f32.vlgmr.msra.gmra.mxu0 %vm242_vm4, %v1229_v22 }
 0x89f   :  { %4193 = vmatprep.mubr.msk.f32.mxu0 %vm4488_vm3, %v4487_v34 }
 0x8a7   :  { %v4427_v23 = vpop.eup %4426 }
 0x8a8   :  { %v1075_v25 = vmul.f32 %v4427_v23, %v4423_v13 }
 0x8aa   :  { %4179 = vmatmul.mubr.msk.f32.vlgmr.msra.gmra.mxu1 %vm242_vm4, %v1075_v25 }
 0x8ab   :  { %4187 = vmatpush3.xpose.msk.msra.mxu1 %vm242_vm4, %v1309_v24  ;;  %4188 = vmatprep.mubr.msk.f32.mxu1 %vm4488_vm3, %v4487_v34 }
 0x8ac   :  { %4196 = vmatprep.subr.mxu1 %v4487_v34 }
 0x8ae   :  { %4189 = vmatmul.mubr.msk.f32.vlgmr.msra.gmra.mxu1 %vm242_vm4, %v1307_v26 }
 0x8af   :  { %4198 = vmatprep.mubr.msk.f32.mxu1 %vm4488_vm3, %v4487_v34 }
 0x935   :  { %v1148_v27 = vpop.f32.mrf.mxu0 }
 0x937   :  { %v4175_v28 = vpop.f32.mrf.mxu0 }
 0x95e   :  { %v1302_v29 = vpop.f32.mrf.mxu0 }
 0x95f   :  { %v1303_v30 = vadd.f32 %v1302_v29, %v4683_v45 }
 0x960   :  { %v4185_v31 = vpop.f32.mrf.mxu0 }
 0x961   :  { %v1384_v38 = vsel %vm242_vm4, %v1303_v30, -inf }
 0x962   :  { %1385 = vmax.xlane.f32.xlu0 %v1384_v38 }
 0x96a   :  { %v1224_v39 = vpop.f32.mrf.mxu1 }
 0x96c   :  { %v4180_v40 = vpop.f32.mrf.mxu1 }
 0x96e   :  { %v1380_v43 = vpop.f32.mrf.mxu1 }
 0x96f   :  { %v1381_v44 = vadd.f32 %v1380_v43, %v4683_v45 }
 0x970   :  { %v4190_v46 = vpop.f32.mrf.mxu1 }
 0x971   :  { %v1387_v47 = vsel %vm242_vm4, %v1381_v44, -inf }
 0x972   :  { %1388 = vmax.xlane.f32.xlu1 %v1387_v47 }
 0x983   :  { %1406 = vrot.lane.b32.xlu1 %v4660_v41, %s4499_s1 }
 0x987   :  { %1560 = vrot.lane.b32.xlu1 %v4763_v59, %s4500_s17 }
 0x98b   :  { %1562 = vrot.lane.b32.xlu1 %v4765_v61, %s4500_s17 }
 0x98f   :  { %1570 = vrot.lane.b32.xlu1 %v1224_v39, %s4501_s18 }
 0x9eb   :  { %v1386_v48 = vpop.xlane.xlu0 %1385 }
 0x9ec   :  { %v1390_v49 = vsub.f32 %v1303_v30, %v1386_v48  ;;  %v1722_v48 = vld [vmem:[%s5239_s6 + $0x10] sm:$0xff] }
 0x9ee   :  { %v1392_v50 = vmul.f32 1.442695, %v1390_v49  ;;  %v1721_v49 = vld [vmem:[%s5239_s6 + $0x8] sm:$0xff] }
 0x9f0   :  { %4428 = vpow2.f32 %v1392_v50  ;;  %v1720_v50 = vld [vmem:[%s5239_s6] sm:$0xff] }
 0x9fb   :  { %v1389_v51 = vpop.xlane.xlu1 %1388 }
 0x9fc   :  { %v1391_v52 = vsub.f32 %v1381_v44, %v1389_v51  ;;  %v1818_v51 = vld [vmem:[%s5240_s7 + $0x38] sm:$0xff] }
 0x9fd   :  { %v4429_v53 = vpop.eup %4428 }
 0x9fe   :  { %v1394_v54 = vmul.f32 1.442695, %v1391_v52  ;;  %v1396_v41 = vsel %vm242_vm4, %v4429_v53, 0.0  ;;  %v1817_v52 = vld [vmem:[%s5240_s7 + $0x30] sm:$0xff] }
 0x9ff   :  { %1397 = vadd.xlane.f32.xlu0 %v1396_v41  ;;  %v1407_v55 = vpop.permute.xlu1 %1406 }
 0xa00   :  { %4430 = vpow2.f32 %v1394_v54  ;;  %4192 = vmatpush3.msra.mxu0 %v1407_v55  ;;  %v1815_v54 = vld [vmem:[%s5240_s7 + $0x20] sm:$0xff] }
 0xa03   :  { %v1561_v8 = vpop.permute.xlu1 %1560 }
 0xa04   :  { %v1582_v10 = vsel %vm242_vm4, %v4721_v12, %v1561_v8  ;;  %v1596_v12 = vsub.s32 1, %v4645_v35  ;;  %v1813_v8 = vld [vmem:[%s5240_s7 + $0x10] sm:$0xff] }
 0xa06   :  { %v1597_v22 = vrot.slane %v4655_v37, %v1596_v12 }
 0xa07   :  { %v1563_v16 = vpop.permute.xlu1 %1562 }
 0xa08   :  { %v1583_v18 = vsel %vm242_vm4, %v4723_v14, %v1563_v16 }
 0xa0b   :  { %v1571_v17 = vpop.permute.xlu1 %1570 }
 0xa0c   :  { %v1586_v19 = vsel %vm1584_vm6, %v1583_v18, %v1571_v17 }
 0xa0d   :  { %v4431_v56 = vpop.eup %4430 }
 0xa0e   :  { %v1399_v57 = vsel %vm242_vm4, %v4431_v56, 0.0 }
 0xa0f   :  { %1400 = vadd.xlane.f32.xlu0 %v1399_v57 }
 0xa25   :  { %1482 = vrot.lane.b32.xlu0 %v4664_v42, %s4499_s1  ;;  %v1593_v42 = vld [vmem:[%s5238_s5 + $0x18] sm:$0xff] }
 0xa26   :  { %4201 = vmatprep.subr.mxu0 %v1593_v42 }
 0xa29   :  { %1568 = vrot.lane.b32.xlu0 %v1148_v27, %s4501_s18 }
 0xa88   :  { %v1398_v58 = vpop.xlane.xlu0 %1397 }
 0xa89   :  { %4432 = vrcp.f32 %v1398_v58 }
 0xa96   :  { %v4433_v59 = vpop.eup %4432 }
 0xa97   :  { %v1404_v60 = vmul.f32 %v4433_v59, %v4429_v53  ;;  %v1816_v53 = vld [vmem:[%s5240_s7 + $0x28] sm:$0xff] }
 0xa98   :  { %v1401_v61 = vpop.xlane.xlu0 %1400 }
 0xa99   :  { %4434 = vrcp.f32 %v1401_v61  ;;  %4194 = vmatmul.mubr.msk.f32.vlgmr.msra.gmra.mxu0 %vm242_vm4, %v1404_v60  ;;  %v1710_v60 = vsub.s32 2, %v4645_v35  ;;  %v1716_v61 = vsub.s32 3, %v4645_v35 }
 0xa9a   :  { %4202 = vmatpush3.msra.mxu0 %v1593_v42 }
 0xa9b   :  { %4203 = vmatprep.subr.mxu0 %v1592_v1  ;;  %v1717_v42 = vrot.slane %v4655_v37, %v1716_v61 }
 0xa9c   :  { %v1483_v62 = vpop.permute.xlu0 %1482  ;;  %4204 = vmatpush3.msra.mxu0 %v1592_v1 }
 0xa9d   :  { %4197 = vmatpush3.msra.mxu1 %v1483_v62  ;;  %4205 = vmatprep.subr.mxu0 %v1591_v2  ;;  %v1711_v62 = vrot.slane %v4655_v37, %v1710_v60 }
 0xa9e   :  { %4206 = vmatpush3.msra.mxu0 %v1591_v2 }
 0xa9f   :  { %4207 = vmatprep.subr.mxu0 %v1590_v3 }
 0xaa0   :  { %4208 = vmatpush3.msra.mxu0 %v1590_v3  ;;  %v1569_v9 = vpop.permute.xlu0 %1568 }
 0xaa1   :  { %v1585_v11 = vsel %vm1584_vm6, %v1582_v10, %v1569_v9  ;;  %4223 = vmatprep.subr.mxu0 %v1818_v51  ;;  %v1812_v9 = vld [vmem:[%s5240_s7 + $0x8] sm:$0xff]  ;;  %v1811_v10 = vld [vmem:[%s5240_s7] sm:$0xff] }
 0xaa6   :  { %v4435_v63 = vpop.eup %4434 }
 0xaa7   :  { %v1405_v0 = vmul.f32 %v4435_v63, %v4431_v56 }
 0xaa9   :  { %4199 = vmatmul.mubr.msk.f32.vlgmr.msra.gmra.mxu1 %vm242_vm4, %v1405_v0 }
 0xb59   :  { %v1478_v4 = vpop.f32.mrf.mxu0 }
 0xb5a   :  { %1576 = vrot.lane.b32.xlu0 %v1478_v4, %s4502_s27 }
 0xb5b   :  { %v4195_v5 = vpop.f32.mrf.mxu0 }
 0xb69   :  { %v1554_v6 = vpop.f32.mrf.mxu1 }
 0xb6a   :  { %1578 = vrot.lane.b32.xlu1 %v1554_v6, %s4502_s27 }
 0xb6b   :  { %v4200_v7 = vpop.f32.mrf.mxu1 }
 0xb6c   :  { %v1814_v7 = vld [vmem:[%s5240_s7 + $0x18] sm:$0xff] }
 0xbcc   :  { %v1577_v13 = vpop.permute.xlu0 %1576 }
 0xbcd   :  { %v1588_v15 = vsel %vm1587_vm5, %v1585_v11, %v1577_v13  ;;  %v1726_v11 = vsub.s32 4, %v4645_v35 }
 0xbce   :  { %4209 = vmatprep.mubr.msk.f32.mxu0 %vm157_vm2, %v1588_v15 }
 0xbcf   :  { %v1727_v13 = vrot.slane %v4655_v37, %v1726_v11 }
 0xbdc   :  { %v1579_v20 = vpop.permute.xlu1 %1578 }
 0xbdd   :  { %v1589_v21 = vsel %vm1587_vm5, %v1586_v19, %v1579_v20 }
 0xbde   :  { %4210 = vmatmul.mubr.msk.f32.vlgmr.msra.gmra.mxu0 %vm157_vm2, %v1589_v21  ;;  %v1821_v21 = vsub.s32 5, %v4645_v35 }
 0xbdf   :  { %4224 = vmatpush3.msra.mxu0 %v1818_v51 }
 0xbe0   :  { %4225 = vmatprep.subr.mxu0 %v1817_v52 }
 0xbe1   :  { %4226 = vmatpush3.msra.mxu0 %v1817_v52 }
 0xbe2   :  { %4227 = vmatprep.subr.mxu0 %v1816_v53 }
 0xbe3   :  { %4228 = vmatpush3.msra.mxu0 %v1816_v53 }
 0xbe4   :  { %4229 = vmatprep.subr.mxu0 %v1815_v54 }
 0xbe5   :  { %4230 = vmatpush3.msra.mxu0 %v1815_v54 }
 0xbe6   :  { %4231 = vmatprep.subr.mxu0 %v1814_v7 }
 0xbe7   :  { %4232 = vmatpush3.msra.mxu0 %v1814_v7 }
 0xbe8   :  { %4233 = vmatprep.subr.mxu0 %v1813_v8 }
 0xbe9   :  { %4234 = vmatpush3.msra.mxu0 %v1813_v8 }
 0xbea   :  { %4235 = vmatprep.subr.mxu0 %v1812_v9 }
 0xbeb   :  { %4236 = vmatpush3.msra.mxu0 %v1812_v9 }
 0xbec   :  { %4237 = vmatprep.subr.mxu0 %v1811_v10 }
 0xbed   :  { %4238 = vmatpush3.msra.mxu0 %v1811_v10 }
 0xbee   :  { %4263 = vmatprep.subr.mxu0 %v4487_v34 }
 0xc9e   :  { %v4211_v23 = vpop.f32.mrf.mxu0 }
 0xc9f   :  { %v1676_v24 = vadd.f32 %v4211_v23, %v1597_v22 }
 0xca0   :  { %v1670_v25 = vpop.f32.mrf.mxu0 }
 0xca1   :  { %v1671_v26 = vadd.f32 %v1670_v25, %v1597_v22  ;;  %v1680_v27 = vadd.f32 %v1676_v24, %v4637_v33  ;;  %v1822_v22 = vrot.slane %v4655_v37, %v1821_v21 }
 0xca3   :  { %v1684_v14 = vsel %vm157_vm2, %v1680_v27, 0.0  ;;  %v1679_v28 = vadd.f32 %v1671_v26, %v4635_v32  ;;  %v1723_v32 = vld [vmem:[%s5239_s6 + $0x18] sm:$0xff] }
 0xca4   :  { %1685 = vadd.xlane.f32.xlu1 %v1684_v14  ;;  %4212 = vmatprep.subr.mxu1 %v1723_v32 }
 0xca5   :  { %v1681_v29 = vsel %vm157_vm2, %v1679_v28, 0.0  ;;  %4213 = vmatpush3.msra.mxu1 %v1723_v32  ;;  %v3879_v32 = vld [vmem:[%s5234_s4 + $0x38] sm:$0xff] }
 0xca6   :  { %1682 = vadd.xlane.f32.xlu0 %v1681_v29  ;;  %4214 = vmatprep.subr.mxu1 %v1722_v48 }
 0xca7   :  { %4215 = vmatpush3.msra.mxu1 %v1722_v48  ;;  %v3878_v48 = vld [vmem:[%s5234_s4 + $0x30] sm:$0xff] }
 0xca8   :  { %4216 = vmatprep.subr.mxu1 %v1721_v49 }
 0xca9   :  { %4217 = vmatpush3.msra.mxu1 %v1721_v49  ;;  %v3877_v49 = vld [vmem:[%s5234_s4 + $0x28] sm:$0xff] }
 0xcaa   :  { %4218 = vmatprep.subr.mxu1 %v1720_v50 }
 0xcab   :  { %4219 = vmatpush3.msra.mxu1 %v1720_v50  ;;  %v3876_v50 = vld [vmem:[%s5234_s4 + $0x20] sm:$0xff] }
 0xcac   :  { %4242 = vmatprep.subr.mxu1 %v3879_v32 }
 0xd2d   :  { %v1686_v30 = vpop.xlane.xlu1 %1685 }
 0xd2e   :  { %v1689_v31 = vmul.f32 0.03125, %v1686_v30 }
 0xd2f   :  { %v1683_v38 = vpop.xlane.xlu0 %1682 }
 0xd30   :  { %v1688_v39 = vmul.f32 0.03125, %v1683_v38  ;;  %v1691_v40 = vsub.f32 %v1680_v27, %v1689_v31 }
 0xd32   :  { %v1690_v43 = vsub.f32 %v1679_v28, %v1688_v39  ;;  %v1693_v47 = vmul.f32 %v1691_v40, %v1691_v40 }
 0xd34   :  { %v1692_v44 = vmul.f32 %v1690_v43, %v1690_v43  ;;  %v1697_v33 = vsel %vm157_vm2, %v1693_v47, 0.0 }
 0xd36   :  { %v1694_v46 = vsel %vm157_vm2, %v1692_v44, 0.0 }
 0xd37   :  { %1695 = vadd.xlane.f32.xlu0 %v1694_v46 }
 0xd3b   :  { %1698 = vadd.xlane.f32.xlu0 %v1697_v33 }
 0xdc0   :  { %v1696_v41 = vpop.xlane.xlu0 %1695 }
 0xdc1   :  { %v1700_v55 = vmul.f32 0.03125, %v1696_v41 }
 0xdc3   :  { %v1702_v56 = vadd.f32 1e-05, %v1700_v55 }
 0xdc4   :  { %v1699_v57 = vpop.xlane.xlu0 %1698 }
 0xdc5   :  { %4436 = vrsqrt.f32 %v1702_v56  ;;  %v1701_v58 = vmul.f32 0.03125, %v1699_v57  ;;  %v1935_v56 = vsub.s32 6, %v4645_v35 }
 0xdc7   :  { %v1703_v59 = vadd.f32 1e-05, %v1701_v58  ;;  %v1936_v58 = vrot.slane %v4655_v37, %v1935_v56 }
 0xdc9   :  { %4438 = vrsqrt.f32 %v1703_v59  ;;  %v1941_v59 = vsub.s32 7, %v4645_v35 }
 0xdd2   :  { %v4437_v63 = vpop.eup %4436 }
 0xdd3   :  { %v1706_v0 = vmul.f32 %v4437_v63, %v1690_v43 }
 0xdd5   :  { %v1712_v1 = vmul.f32 %v1711_v62, %v1706_v0 }
 0xdd6   :  { %v4439_v2 = vpop.eup %4438 }
 0xdd7   :  { %v1707_v3 = vmul.f32 %v4439_v2, %v1691_v40  ;;  %v1718_v4 = vadd.f32 %v1717_v42, %v1712_v1  ;;  %v1942_v1 = vrot.slane %v4655_v37, %v1941_v59 }
 0xdd9   :  { %v1713_v5 = vmul.f32 %v1711_v62, %v1707_v3  ;;  %4220 = vmatprep.mubr.msk.f32.mxu1 %vm157_vm2, %v1718_v4 }
 0xddb   :  { %v1719_v6 = vadd.f32 %v1717_v42, %v1713_v5  ;;  %v4950_v5 = vld [vmem:[%s5236_s8 + $0x8] sm:$0xff] }
 0xddc   :  { %v1955_v37 = vrot.slane %v4950_v5, %v155_v36 }
 0xddd   :  { %4221 = vmatmul.mubr.msk.f32.vlgmr.msra.gmra.mxu1 %vm157_vm2, %v1719_v6 }
 0xdde   :  { %4243 = vmatpush3.msra.mxu1 %v3879_v32 }
 0xddf   :  { %4244 = vmatprep.subr.mxu1 %v3878_v48 }
 0xde0   :  { %4245 = vmatpush3.msra.mxu1 %v3878_v48 }
 0xde1   :  { %4246 = vmatprep.subr.mxu1 %v3877_v49 }
 0xde2   :  { %4247 = vmatpush3.msra.mxu1 %v3877_v49 }
 0xde3   :  { %4248 = vmatprep.subr.mxu1 %v3876_v50 }
 0xde4   :  { %4249 = vmatpush3.msra.mxu1 %v3876_v50 }
 0xde5   :  { %4253 = vmatprep.subr.mxu1 %v4487_v34 }
 0xe9d   :  { %v4222_v15 = vpop.f32.mrf.mxu1 }
 0xe9e   :  { %v1806_v16 = vadd.f32 %v4222_v15, %v1727_v13 }
 0xe9f   :  { %v1800_v17 = vpop.f32.mrf.mxu1 }
 0xea0   :  { %v1801_v18 = vadd.f32 %v1800_v17, %v1727_v13  ;;  %v1810_v20 = vmax.f32 %v1806_v16, 0.0 }
 0xea2   :  { %v1809_v19 = vmax.f32 %v1801_v18, 0.0 }
 0xea4   :  { %4239 = vmatprep.mubr.msk.f32.mxu0 %vm1823_vm7, %v1809_v19 }
 0xea5   :  { %4240 = vmatmul.mubr.msk.f32.vlgmr.msra.gmra.mxu0 %vm1823_vm7, %v1810_v20 }
 0xea6   :  { %4265 = vmatprep.mubr.msk.f32.mxu0 %vm4488_vm3, %v4487_v34 }
 0xf65   :  { %v4241_v23 = vpop.f32.mrf.mxu0 }
 0xf66   :  { %v1902_v24 = vadd.f32 %v4241_v23, %v1822_v22 }
 0xf67   :  { %v1896_v25 = vpop.f32.mrf.mxu0 }
 0xf68   :  { %v1897_v26 = vadd.f32 %v1896_v25, %v1822_v22  ;;  %v1906_v27 = vadd.f32 %v1902_v24, %v1719_v6 }
 0xf6a   :  { %v1910_v14 = vsel %vm157_vm2, %v1906_v27, 0.0  ;;  %v1905_v28 = vadd.f32 %v1897_v26, %v1718_v4 }
 0xf6b   :  { %1911 = vadd.xlane.f32.xlu0 %v1910_v14 }
 0xf6c   :  { %v1907_v29 = vsel %vm157_vm2, %v1905_v28, 0.0 }
 0xf6d   :  { %1908 = vadd.xlane.f32.xlu1 %v1907_v29 }
 0xff4   :  { %v1912_v30 = vpop.xlane.xlu0 %1911 }
 0xff5   :  { %v1914_v31 = vmul.f32 0.03125, %v1912_v30 }
 0xff6   :  { %v1909_v38 = vpop.xlane.xlu1 %1908 }
 0xff7   :  { %v1916_v39 = vsub.f32 %v1906_v27, %v1914_v31  ;;  %v1913_v40 = vmul.f32 0.03125, %v1909_v38 }
 0xff9   :  { %v1915_v43 = vsub.f32 %v1905_v28, %v1913_v40  ;;  %v1918_v44 = vmul.f32 %v1916_v39, %v1916_v39 }
 0xffb   :  { %v1922_v46 = vsel %vm157_vm2, %v1918_v44, 0.0  ;;  %v1917_v47 = vmul.f32 %v1915_v43, %v1915_v43 }
 0xffc   :  { %1923 = vadd.xlane.f32.xlu0 %v1922_v46 }
 0xffd   :  { %v1919_v33 = vsel %vm157_vm2, %v1917_v47, 0.0 }
 0xffe   :  { %1920 = vadd.xlane.f32.xlu1 %v1919_v33 }
0x1085   :  { %v1924_v51 = vpop.xlane.xlu0 %1923 }
0x1086   :  { %v1926_v52 = vmul.f32 0.03125, %v1924_v51 }
0x1087   :  { %v1921_v53 = vpop.xlane.xlu1 %1920 }
0x1088   :  { %v1928_v54 = vadd.f32 1e-05, %v1926_v52  ;;  %v1925_v41 = vmul.f32 0.03125, %v1921_v53 }
0x108a   :  { %4440 = vrsqrt.f32 %v1928_v54  ;;  %v1927_v55 = vadd.f32 1e-05, %v1925_v41  ;;  %v5018_v54 = vld [vmem:[%s5237_s3] sm:$0xff] }
0x108c   :  { %4442 = vrsqrt.f32 %v1927_v55 }
0x1097   :  { %v4441_v57 = vpop.eup %4440 }
0x1098   :  { %v1932_v62 = vmul.f32 %v4441_v57, %v1916_v39 }
0x1099   :  { %v4443_v63 = vpop.eup %4442 }
0x109a   :  { %v1931_v0 = vmul.f32 %v4443_v63, %v1915_v43  ;;  %v1938_v42 = vmul.f32 %v1936_v58, %v1932_v62 }
0x109c   :  { %v1937_v2 = vmul.f32 %v1936_v58, %v1931_v0  ;;  %v4939_v4 = vadd.f32 %v1942_v1, %v1938_v42 }
0x109e   :  { %v4937_v3 = vadd.f32 %v1942_v1, %v1937_v2 }
0x10a0   :  { %4250 = vmatprep.mubr.msk.f32.mxu1 %vm157_vm2, %v4937_v3 }
0x10a1   :  { %4251 = vmatmul.mubr.msk.f32.vlgmr.msra.gmra.mxu1 %vm157_vm2, %v4939_v4 }
0x10a2   :  { %4255 = vmatprep.mubr.msk.f32.mxu1 %vm4488_vm3, %v4487_v34 }
0x1161   :  { %v4252_v6 = vpop.f32.mrf.mxu1 }
0x1162   :  { %v4955_v7 = vadd.f32 %v4252_v6, %v1955_v37 }
0x1163   :  { %v2028_v8 = vpop.f32.mrf.mxu1 }
0x1164   :  { %v4957_v9 = vadd.f32 %v2028_v8, %v1955_v37  ;;  %2115 = vrot.lane.b32.xlu0 %v4955_v7, %s4489_s25 }
0x1166   :  { %2038 = vrot.lane.b32.xlu1 %v4957_v9, %s4489_s25 }
0x11d6   :  { %v2116_v13 = vpop.permute.xlu0 %2115 }
0x11d8   :  { %v2039_v10 = vpop.permute.xlu1 %2038 }
0x11d9   :  { %4254 = vmatpush3.xpose.msk.msra.mxu1 %vm242_vm4, %v2039_v10 }
0x11da   :  { %4258 = vmatprep.subr.mxu1 %v4487_v34 }
0x11dc   :  { %4256 = vmatmul.mubr.msk.f32.vlgmr.msra.gmra.mxu1 %vm242_vm4, %v4957_v9 }
0x11dd   :  { %4259 = vmatpush3.xpose.msk.msra.mxu1 %vm242_vm4, %v2116_v13  ;;  %4260 = vmatprep.mubr.msk.f32.mxu1 %vm4488_vm3, %v4487_v34 }
0x11de   :  { %4268 = vmatprep.subr.mxu1 %v4487_v34 }
0x11e0   :  { %4261 = vmatmul.mubr.msk.f32.vlgmr.msra.gmra.mxu1 %vm242_vm4, %v4955_v7 }
0x11e1   :  { %4270 = vmatprep.mubr.msk.f32.mxu1 %vm4488_vm3, %v4487_v34 }
0x129c   :  { %v2110_v36 = vpop.f32.mrf.mxu1 }
0x129d   :  { %v2111_v15 = vadd.f32 %v2110_v36, %v4683_v45 }
0x129e   :  { %v4257_v16 = vpop.f32.mrf.mxu1 }
0x129f   :  { %v2191_v17 = vsel %vm242_vm4, %v2111_v15, -inf }
0x12a0   :  { %2192 = vmax.xlane.f32.xlu1 %v2191_v17  ;;  %v2187_v18 = vpop.f32.mrf.mxu1 }
0x12a1   :  { %v2188_v19 = vadd.f32 %v2187_v18, %v4683_v45 }
0x12a2   :  { %v4262_v20 = vpop.f32.mrf.mxu1 }
0x12a3   :  { %v2194_v22 = vsel %vm242_vm4, %v2188_v19, -inf }
0x12a4   :  { %2195 = vmax.xlane.f32.xlu0 %v2194_v22 }
0x12b1   :  { %2213 = vrot.lane.b32.xlu1 %v4957_v9, %s4490_s28 }
0x12b5   :  { %2367 = vrot.lane.b32.xlu1 %v4957_v9, %s4491_s29 }
0x12b9   :  { %2445 = vrot.lane.b32.xlu1 %v4955_v7, %s4491_s29 }
0x12ba   :  { %2289 = vrot.lane.b32.xlu0 %v4955_v7, %s4490_s28 }
0x1329   :  { %v2193_v23 = vpop.xlane.xlu1 %2192 }
0x132a   :  { %v2197_v24 = vsub.f32 %v2111_v15, %v2193_v23 }
0x132c   :  { %v2199_v25 = vmul.f32 1.442695, %v2197_v24 }
0x132d   :  { %v2214_v45 = vpop.permute.xlu1 %2213  ;;  %v2196_v26 = vpop.xlane.xlu0 %2195 }
0x132e   :  { %4444 = vpow2.f32 %v2199_v25  ;;  %v2198_v27 = vsub.f32 %v2188_v19, %v2196_v26  ;;  %4264 = vmatpush3.msra.mxu0 %v2214_v45 }
0x132f   :  { %4273 = vmatprep.subr.mxu0 %v4487_v34 }
0x1330   :  { %v2201_v14 = vmul.f32 1.442695, %v2198_v27 }
0x1331   :  { %v2290_v28 = vpop.permute.xlu0 %2289  ;;  %v2368_v39 = vpop.permute.xlu1 %2367 }
0x1332   :  { %4446 = vpow2.f32 %v2201_v14  ;;  %4269 = vmatpush3.msra.mxu1 %v2290_v28 }
0x1333   :  { %4278 = vmatprep.subr.mxu1 %v4487_v34 }
0x1335   :  { %v2446_v40 = vpop.permute.xlu1 %2445 }
0x133b   :  { %v4445_v29 = vpop.eup %4444 }
0x133c   :  { %v2203_v30 = vsel %vm242_vm4, %v4445_v29, 0.0 }
0x133d   :  { %2204 = vadd.xlane.f32.xlu1 %v2203_v30 }
0x133f   :  { %v4447_v31 = vpop.eup %4446 }
0x1340   :  { %v2206_v38 = vsel %vm242_vm4, %v4447_v31, 0.0 }
0x1341   :  { %2207 = vadd.xlane.f32.xlu0 %v2206_v38 }
0x134e   :  { %2443 = vrot.lane.b32.xlu1 %v4955_v7, %s4492_s30 }
0x1357   :  { %2365 = vrot.lane.b32.xlu0 %v4957_v9, %s4492_s30 }
0x13c6   :  { %v2205_v43 = vpop.xlane.xlu1 %2204 }
0x13c7   :  { %4448 = vrcp.f32 %v2205_v43 }
0x13ca   :  { %v2208_v44 = vpop.xlane.xlu0 %2207  ;;  %v2444_v49 = vpop.permute.xlu1 %2443 }
0x13cb   :  { %4450 = vrcp.f32 %v2208_v44 }
0x13ce   :  { %v2366_v48 = vpop.permute.xlu0 %2365 }
0x13d4   :  { %v4449_v46 = vpop.eup %4448 }
0x13d5   :  { %v2211_v47 = vmul.f32 %v4449_v46, %v4445_v29 }
0x13d7   :  { %4266 = vmatmul.mubr.msk.f32.vlgmr.msra.gmra.mxu0 %vm242_vm4, %v2211_v47 }
0x13d8   :  { %v4451_v33 = vpop.eup %4450  ;;  %4274 = vmatpush3.xpose.msk.msra.mxu0 %vm242_vm4, %v2368_v39  ;;  %4275 = vmatprep.mubr.msk.f32.mxu0 %vm4488_vm3, %v4487_v34 }
0x13d9   :  { %v2212_v32 = vmul.f32 %v4451_v33, %v4447_v31  ;;  %4283 = vmatprep.subr.mxu0 %v4487_v34 }
0x13db   :  { %4271 = vmatmul.mubr.msk.f32.vlgmr.msra.gmra.mxu1 %vm242_vm4, %v2212_v32  ;;  %4276 = vmatmul.mubr.msk.f32.vlgmr.msra.gmra.mxu0 %vm242_vm4, %v2366_v48 }
0x13dc   :  { %4279 = vmatpush3.xpose.msk.msra.mxu1 %vm242_vm4, %v2446_v40  ;;  %4280 = vmatprep.mubr.msk.f32.mxu1 %vm4488_vm3, %v4487_v34 }
0x13dd   :  { %4288 = vmatprep.subr.mxu1 %v4487_v34  ;;  %4285 = vmatprep.mubr.msk.f32.mxu0 %vm4488_vm3, %v4487_v34 }
0x13df   :  { %4281 = vmatmul.mubr.msk.f32.vlgmr.msra.gmra.mxu1 %vm242_vm4, %v2444_v49 }
0x13e0   :  { %4290 = vmatprep.mubr.msk.f32.mxu1 %vm4488_vm3, %v4487_v34 }
0x1497   :  { %v5011_v50 = vpop.f32.mrf.mxu0 }
0x1499   :  { %v4267_v51 = vpop.f32.mrf.mxu0 }
0x149b   :  { %v5013_v52 = vpop.f32.mrf.mxu1  ;;  %v2439_v53 = vpop.f32.mrf.mxu0 }
0x149c   :  { %v2440_v41 = vadd.f32 %v5018_v54, %v2439_v53 }
0x149d   :  { %v4272_v55 = vpop.f32.mrf.mxu1  ;;  %v4277_v57 = vpop.f32.mrf.mxu0 }
0x149e   :  { %v2521_v58 = vsel %vm242_vm4, %v2440_v41, -inf }
0x149f   :  { %2522 = vmax.xlane.f32.xlu0 %v2521_v58  ;;  %v2517_v62 = vpop.f32.mrf.mxu1 }
0x14a0   :  { %v2518_v63 = vadd.f32 %v5018_v54, %v2517_v62 }
0x14a1   :  { %v4282_v0 = vpop.f32.mrf.mxu1 }
0x14a2   :  { %v2524_v42 = vsel %vm242_vm4, %v2518_v63, -inf }
0x14a3   :  { %2525 = vmax.xlane.f32.xlu1 %v2524_v42 }
0x14b4   :  { %2543 = vrot.lane.b32.xlu1 %v4957_v9, %s4493_s12 }
0x14b5   :  { %2619 = vrot.lane.b32.xlu0 %v4955_v7, %s4493_s12 }
0x14b8   :  { %2697 = vrot.lane.b32.xlu1 %v4957_v9, %s4494_s0 }
0x14bc   :  { %2775 = vrot.lane.b32.xlu1 %v4955_v7, %s4494_s0 }
0x14c0   :  { %2773 = vrot.lane.b32.xlu1 %v4955_v7, %s4495_s13 }
0x1528   :  { %v2523_v1 = vpop.xlane.xlu0 %2522 }
0x1529   :  { %v2527_v2 = vsub.f32 %v2440_v41, %v2523_v1 }
0x152b   :  { %v2529_v37 = vmul.f32 1.442695, %v2527_v2 }
0x152c   :  { %v2620_v6 = vpop.permute.xlu0 %2619  ;;  %v2526_v8 = vpop.xlane.xlu1 %2525 }
0x152d   :  { %4452 = vpow2.f32 %v2529_v37  ;;  %v2528_v10 = vsub.f32 %v2518_v63, %v2526_v8  ;;  %4289 = vmatpush3.msra.mxu1 %v2620_v6 }
0x152e   :  { %4298 = vmatprep.subr.mxu1 %v4487_v34 }
0x152f   :  { %v2531_v13 = vmul.f32 1.442695, %v2528_v10 }
0x1530   :  { %v2544_v36 = vpop.permute.xlu1 %2543 }
0x1531   :  { %4454 = vpow2.f32 %v2531_v13  ;;  %4284 = vmatpush3.msra.mxu0 %v2544_v36 }
0x1532   :  { %4293 = vmatprep.subr.mxu0 %v4487_v34 }
0x1534   :  { %v2698_v22 = vpop.permute.xlu1 %2697 }
0x1538   :  { %v2776_v45 = vpop.permute.xlu1 %2775 }
0x153a   :  { %v4453_v15 = vpop.eup %4452 }
0x153b   :  { %v2533_v16 = vsel %vm242_vm4, %v4453_v15, 0.0 }
0x153c   :  { %2534 = vadd.xlane.f32.xlu0 %v2533_v16  ;;  %v2774_v14 = vpop.permute.xlu1 %2773 }
0x153e   :  { %v4455_v17 = vpop.eup %4454 }
0x153f   :  { %v2536_v18 = vsel %vm242_vm4, %v4455_v17, 0.0 }
0x1540   :  { %2537 = vadd.xlane.f32.xlu0 %v2536_v18 }
0x1556   :  { %2695 = vrot.lane.b32.xlu0 %v4957_v9, %s4495_s13 }
0x15c5   :  { %v2535_v19 = vpop.xlane.xlu0 %2534 }
0x15c6   :  { %4456 = vrcp.f32 %v2535_v19 }
0x15c9   :  { %v2538_v20 = vpop.xlane.xlu0 %2537 }
0x15ca   :  { %4458 = vrcp.f32 %v2538_v20 }
0x15cd   :  { %v2696_v27 = vpop.permute.xlu0 %2695 }
0x15d3   :  { %v4457_v23 = vpop.eup %4456 }
0x15d4   :  { %v2541_v24 = vmul.f32 %v4457_v23, %v4453_v15 }
0x15d6   :  { %4286 = vmatmul.mubr.msk.f32.vlgmr.msra.gmra.mxu0 %vm242_vm4, %v2541_v24 }
0x15d7   :  { %v4459_v25 = vpop.eup %4458  ;;  %4294 = vmatpush3.xpose.msk.msra.mxu0 %vm242_vm4, %v2698_v22  ;;  %4295 = vmatprep.mubr.msk.f32.mxu0 %vm4488_vm3, %v4487_v34 }
0x15d8   :  { %v2542_v26 = vmul.f32 %v4459_v25, %v4455_v17  ;;  %4303 = vmatprep.subr.mxu0 %v4487_v34 }
0x15da   :  { %4291 = vmatmul.mubr.msk.f32.vlgmr.msra.gmra.mxu1 %vm242_vm4, %v2542_v26  ;;  %4296 = vmatmul.mubr.msk.f32.vlgmr.msra.gmra.mxu0 %vm242_vm4, %v2696_v27 }
0x15db   :  { %4299 = vmatpush3.xpose.msk.msra.mxu1 %vm242_vm4, %v2776_v45  ;;  %4300 = vmatprep.mubr.msk.f32.mxu1 %vm4488_vm3, %v4487_v34 }
0x15dc   :  { %4308 = vmatprep.subr.mxu1 %v4487_v34  ;;  %4305 = vmatprep.mubr.msk.f32.mxu0 %vm4488_vm3, %v4487_v34 }
0x15de   :  { %4301 = vmatmul.mubr.msk.f32.vlgmr.msra.gmra.mxu1 %vm242_vm4, %v2774_v14 }
0x15df   :  { %4310 = vmatprep.mubr.msk.f32.mxu1 %vm4488_vm3, %v4487_v34 }
0x1696   :  { %v5056_v28 = vpop.f32.mrf.mxu0 }
0x1698   :  { %v4287_v29 = vpop.f32.mrf.mxu0 }
0x169a   :  { %v5058_v30 = vpop.f32.mrf.mxu1  ;;  %v2769_v31 = vpop.f32.mrf.mxu0 }
0x169b   :  { %v2770_v38 = vadd.f32 %v5018_v54, %v2769_v31 }
0x169c   :  { %v4292_v39 = vpop.f32.mrf.mxu1  ;;  %v4297_v40 = vpop.f32.mrf.mxu0 }
0x169d   :  { %v2851_v43 = vsel %vm242_vm4, %v2770_v38, -inf }
0x169e   :  { %2852 = vmax.xlane.f32.xlu0 %v2851_v43  ;;  %v2847_v44 = vpop.f32.mrf.mxu1 }
0x169f   :  { %v2848_v46 = vadd.f32 %v5018_v54, %v2847_v44 }
0x16a0   :  { %v4302_v47 = vpop.f32.mrf.mxu1 }
0x16a1   :  { %v2854_v33 = vsel %vm242_vm4, %v2848_v46, -inf }
0x16a2   :  { %2855 = vmax.xlane.f32.xlu1 %v2854_v33 }
0x16b3   :  { %2873 = vrot.lane.b32.xlu1 %v4957_v9, %s4496_s14 }
0x16b4   :  { %2949 = vrot.lane.b32.xlu0 %v4955_v7, %s4496_s14 }
0x16b7   :  { %3027 = vrot.lane.b32.xlu1 %v4957_v9, %s4497_s15 }
0x16bb   :  { %3105 = vrot.lane.b32.xlu1 %v4955_v7, %s4497_s15 }
0x16bf   :  { %3103 = vrot.lane.b32.xlu1 %v4955_v7, %s4498_s16 }
0x1727   :  { %v2853_v32 = vpop.xlane.xlu0 %2852 }
0x1728   :  { %v2857_v48 = vsub.f32 %v2770_v38, %v2853_v32 }
0x172a   :  { %v2859_v49 = vmul.f32 1.442695, %v2857_v48 }
0x172b   :  { %v2950_v51 = vpop.permute.xlu0 %2949  ;;  %v2856_v53 = vpop.xlane.xlu1 %2855 }
0x172c   :  { %4460 = vpow2.f32 %v2859_v49  ;;  %v2858_v41 = vsub.f32 %v2848_v46, %v2856_v53  ;;  %4309 = vmatpush3.msra.mxu1 %v2950_v51  ;;  %v3908_v49 = vld [vmem:[%s5238_s5 + $0x30] sm:$0xff]  ;;  %v3907_v51 = vld [vmem:[%s5238_s5 + $0x28] sm:$0xff]  ;;  %v3906_v53 = vld [vmem:[%s5238_s5 + $0x20] sm:$0xff] }
0x172d   :  { %4318 = vmatprep.subr.mxu1 %v4487_v34 }
0x172e   :  { %v2861_v55 = vmul.f32 1.442695, %v2858_v41 }
0x172f   :  { %v2874_v57 = vpop.permute.xlu1 %2873 }
0x1730   :  { %4462 = vpow2.f32 %v2861_v55  ;;  %4304 = vmatpush3.msra.mxu0 %v2874_v57 }
0x1731   :  { %4313 = vmatprep.subr.mxu0 %v4487_v34 }
0x1733   :  { %v3028_v2 = vpop.permute.xlu1 %3027 }
0x1737   :  { %v3106_v10 = vpop.permute.xlu1 %3105 }
0x1739   :  { %v4461_v58 = vpop.eup %4460 }
0x173a   :  { %v2863_v62 = vsel %vm242_vm4, %v4461_v58, 0.0 }
0x173b   :  { %2864 = vadd.xlane.f32.xlu0 %v2863_v62  ;;  %v3104_v15 = vpop.permute.xlu1 %3103 }
0x173d   :  { %v4463_v63 = vpop.eup %4462 }
0x173e   :  { %v2866_v0 = vsel %vm242_vm4, %v4463_v63, 0.0 }
0x173f   :  { %2867 = vadd.xlane.f32.xlu0 %v2866_v0 }
0x1755   :  { %3025 = vrot.lane.b32.xlu0 %v4957_v9, %s4498_s16 }
0x17c4   :  { %v2865_v42 = vpop.xlane.xlu0 %2864 }
0x17c5   :  { %4464 = vrcp.f32 %v2865_v42 }
0x17c8   :  { %v2868_v1 = vpop.xlane.xlu0 %2867 }
0x17c9   :  { %4466 = vrcp.f32 %v2868_v1 }
0x17cc   :  { %v3026_v36 = vpop.permute.xlu0 %3025 }
0x17d2   :  { %v4465_v37 = vpop.eup %4464 }
0x17d3   :  { %v2871_v6 = vmul.f32 %v4465_v37, %v4461_v58 }
0x17d5   :  { %4306 = vmatmul.mubr.msk.f32.vlgmr.msra.gmra.mxu0 %vm242_vm4, %v2871_v6 }
0x17d6   :  { %v4467_v8 = vpop.eup %4466  ;;  %4314 = vmatpush3.xpose.msk.msra.mxu0 %vm242_vm4, %v3028_v2  ;;  %4315 = vmatprep.mubr.msk.f32.mxu0 %vm4488_vm3, %v4487_v34 }
0x17d7   :  { %v2872_v13 = vmul.f32 %v4467_v8, %v4463_v63  ;;  %4323 = vmatprep.subr.mxu0 %v4487_v34 }
0x17d9   :  { %4311 = vmatmul.mubr.msk.f32.vlgmr.msra.gmra.mxu1 %vm242_vm4, %v2872_v13  ;;  %4316 = vmatmul.mubr.msk.f32.vlgmr.msra.gmra.mxu0 %vm242_vm4, %v3026_v36 }
0x17da   :  { %4319 = vmatpush3.xpose.msk.msra.mxu1 %vm242_vm4, %v3106_v10  ;;  %4320 = vmatprep.mubr.msk.f32.mxu1 %vm4488_vm3, %v4487_v34 }
0x17db   :  { %4328 = vmatprep.subr.mxu1 %v4487_v34  ;;  %4325 = vmatprep.mubr.msk.f32.mxu0 %vm4488_vm3, %v4487_v34 }
0x17dd   :  { %4321 = vmatmul.mubr.msk.f32.vlgmr.msra.gmra.mxu1 %vm242_vm4, %v3104_v15 }
0x17de   :  { %4330 = vmatprep.mubr.msk.f32.mxu1 %vm4488_vm3, %v4487_v34 }
0x1895   :  { %v2945_v16 = vpop.f32.mrf.mxu0 }
0x1897   :  { %v4307_v17 = vpop.f32.mrf.mxu0 }
0x1899   :  { %v3021_v18 = vpop.f32.mrf.mxu1  ;;  %v3099_v19 = vpop.f32.mrf.mxu0 }
0x189a   :  { %v3100_v20 = vadd.f32 %v5018_v54, %v3099_v19 }
0x189b   :  { %v4312_v22 = vpop.f32.mrf.mxu1  ;;  %v4317_v23 = vpop.f32.mrf.mxu0 }
0x189c   :  { %v3181_v24 = vsel %vm242_vm4, %v3100_v20, -inf }
0x189d   :  { %3182 = vmax.xlane.f32.xlu0 %v3181_v24  ;;  %v3177_v25 = vpop.f32.mrf.mxu1 }
0x189e   :  { %v3178_v45 = vadd.f32 %v5018_v54, %v3177_v25 }
0x189f   :  { %v4322_v26 = vpop.f32.mrf.mxu1 }
0x18a0   :  { %v3184_v27 = vsel %vm242_vm4, %v3178_v45, -inf }
0x18a1   :  { %3185 = vmax.xlane.f32.xlu1 %v3184_v27 }
0x18b2   :  { %3203 = vrot.lane.b32.xlu1 %v4957_v9, %s4499_s1 }
0x18b6   :  { %3357 = vrot.lane.b32.xlu1 %v5056_v28, %s4500_s17 }
0x18ba   :  { %3359 = vrot.lane.b32.xlu1 %v5058_v30, %s4500_s17 }
0x18be   :  { %3367 = vrot.lane.b32.xlu1 %v3021_v18, %s4501_s18 }
0x1926   :  { %v3183_v34 = vpop.xlane.xlu0 %3182 }
0x1927   :  { %v3187_v14 = vsub.f32 %v3100_v20, %v3183_v34 }
0x1929   :  { %v3189_v29 = vmul.f32 1.442695, %v3187_v14 }
0x192a   :  { %v3186_v31 = vpop.xlane.xlu1 %3185 }
0x192b   :  { %4468 = vpow2.f32 %v3189_v29  ;;  %v3188_v54 = vsub.f32 %v3178_v45, %v3186_v31  ;;  %v3914_v29 = vld [vmem:[%s5239_s6 + $0x30] sm:$0xff]  ;;  %v3913_v31 = vld [vmem:[%s5239_s6 + $0x28] sm:$0xff] }
0x192d   :  { %v3191_v38 = vmul.f32 1.442695, %v3188_v54  ;;  %v3912_v54 = vld [vmem:[%s5239_s6 + $0x20] sm:$0xff] }
0x192e   :  { %v3204_v39 = vpop.permute.xlu1 %3203 }
0x192f   :  { %4470 = vpow2.f32 %v3191_v38  ;;  %4324 = vmatpush3.msra.mxu0 %v3204_v39  ;;  %v3925_v38 = vld [vmem:[%s5240_s7 + $0x78] sm:$0xff]  ;;  %v3924_v39 = vld [vmem:[%s5240_s7 + $0x70] sm:$0xff] }
0x1932   :  { %v3358_v62 = vpop.permute.xlu1 %3357 }
0x1933   :  { %v3379_v42 = vsel %vm242_vm4, %v5011_v50, %v3358_v62  ;;  %v3393_v50 = vrot.slane %v4950_v5, %v1596_v12  ;;  %v3918_v62 = vld [vmem:[%s5240_s7 + $0x40] sm:$0xff] }
0x1936   :  { %v3360_v63 = vpop.permute.xlu1 %3359 }
0x1937   :  { %v3380_v8 = vsel %vm242_vm4, %v5013_v52, %v3360_v63  ;;  %v3523_v63 = vrot.slane %v4950_v5, %v1726_v11 }
0x1938   :  { %v4469_v40 = vpop.eup %4468 }
0x1939   :  { %v3193_v9 = vsel %vm242_vm4, %v4469_v40, 0.0 }
0x193a   :  { %3194 = vadd.xlane.f32.xlu0 %v3193_v9  ;;  %v3368_v1 = vpop.permute.xlu1 %3367  ;;  %v3922_v9 = vld [vmem:[%s5240_s7 + $0x60] sm:$0xff] }
0x193b   :  { %v3382_v10 = vsel %vm1584_vm6, %v3380_v8, %v3368_v1  ;;  %v3619_v8 = vrot.slane %v4950_v5, %v1821_v21 }
0x193c   :  { %v4471_v28 = vpop.eup %4470 }
0x193d   :  { %v3196_v43 = vsel %vm242_vm4, %v4471_v28, 0.0 }
0x193e   :  { %3197 = vadd.xlane.f32.xlu0 %v3196_v43 }
0x1954   :  { %3279 = vrot.lane.b32.xlu0 %v4955_v7, %s4499_s1  ;;  %v3909_v7 = vld [vmem:[%s5238_s5 + $0x38] sm:$0xff] }
0x1955   :  { %4333 = vmatprep.subr.mxu0 %v3909_v7 }
0x1958   :  { %3365 = vrot.lane.b32.xlu0 %v2945_v16, %s4501_s18 }
0x19c3   :  { %v3195_v30 = vpop.xlane.xlu0 %3194 }
0x19c4   :  { %4472 = vrcp.f32 %v3195_v30 }
0x19c7   :  { %v3198_v44 = vpop.xlane.xlu0 %3197 }
0x19c8   :  { %4474 = vrcp.f32 %v3198_v44 }
0x19cb   :  { %v3280_v46 = vpop.permute.xlu0 %3279 }
0x19cc   :  { %4329 = vmatpush3.msra.mxu1 %v3280_v46 }
0x19cf   :  { %v3366_v0 = vpop.permute.xlu0 %3365 }
0x19d0   :  { %v3381_v2 = vsel %vm1584_vm6, %v3379_v42, %v3366_v0 }
0x19d1   :  { %v4473_v47 = vpop.eup %4472 }
0x19d2   :  { %v3201_v33 = vmul.f32 %v4473_v47, %v4469_v40  ;;  %v3923_v40 = vld [vmem:[%s5240_s7 + $0x68] sm:$0xff] }
0x19d4   :  { %4326 = vmatmul.mubr.msk.f32.vlgmr.msra.gmra.mxu0 %vm242_vm4, %v3201_v33  ;;  %v3506_v33 = vrot.slane %v4950_v5, %v1710_v60  ;;  %v3921_v60 = vld [vmem:[%s5240_s7 + $0x58] sm:$0xff] }
0x19d5   :  { %v4475_v32 = vpop.eup %4474  ;;  %4334 = vmatpush3.msra.mxu0 %v3909_v7  ;;  %v3512_v7 = vrot.slane %v4950_v5, %v1716_v61  ;;  %v3920_v61 = vld [vmem:[%s5240_s7 + $0x50] sm:$0xff] }
0x19d6   :  { %v3202_v48 = vmul.f32 %v4475_v32, %v4471_v28  ;;  %4335 = vmatprep.subr.mxu0 %v3908_v49 }
0x19d7   :  { %4336 = vmatpush3.msra.mxu0 %v3908_v49 }
0x19d8   :  { %4331 = vmatmul.mubr.msk.f32.vlgmr.msra.gmra.mxu1 %vm242_vm4, %v3202_v48  ;;  %4337 = vmatprep.subr.mxu0 %v3907_v51 }
0x19d9   :  { %4338 = vmatpush3.msra.mxu0 %v3907_v51 }
0x19da   :  { %4339 = vmatprep.subr.mxu0 %v3906_v53 }
0x19db   :  { %4340 = vmatpush3.msra.mxu0 %v3906_v53 }
0x19dc   :  { %4355 = vmatprep.subr.mxu0 %v3925_v38 }
0x1a94   :  { %v3275_v41 = vpop.f32.mrf.mxu0 }
0x1a95   :  { %3373 = vrot.lane.b32.xlu0 %v3275_v41, %s4502_s27 }
0x1a96   :  { %v4327_v55 = vpop.f32.mrf.mxu0 }
0x1a98   :  { %v3351_v57 = vpop.f32.mrf.mxu1 }
0x1a99   :  { %3375 = vrot.lane.b32.xlu1 %v3351_v57, %s4502_s27 }
0x1a9a   :  { %v4332_v58 = vpop.f32.mrf.mxu1 }
0x1a9b   :  { %v3919_v58 = vld [vmem:[%s5240_s7 + $0x48] sm:$0xff] }
0x1b07   :  { %v3374_v37 = vpop.permute.xlu0 %3373 }
0x1b08   :  { %v3383_v6 = vsel %vm1587_vm5, %v3381_v2, %v3374_v37 }
0x1b09   :  { %4341 = vmatprep.mubr.msk.f32.mxu0 %vm157_vm2, %v3383_v6 }
0x1b0b   :  { %v3376_v13 = vpop.permute.xlu1 %3375 }
0x1b0c   :  { %v3384_v36 = vsel %vm1587_vm5, %v3382_v10, %v3376_v13 }
0x1b0d   :  { %4342 = vmatmul.mubr.msk.f32.vlgmr.msra.gmra.mxu0 %vm157_vm2, %v3384_v36 }
0x1b0e   :  { %4356 = vmatpush3.msra.mxu0 %v3925_v38 }
0x1b0f   :  { %4357 = vmatprep.subr.mxu0 %v3924_v39 }
0x1b10   :  { %4358 = vmatpush3.msra.mxu0 %v3924_v39  ;;  %v3732_v39 = vrot.slane %v4950_v5, %v1935_v56 }
0x1b11   :  { %4359 = vmatprep.subr.mxu0 %v3923_v40 }
0x1b12   :  { %4360 = vmatpush3.msra.mxu0 %v3923_v40 }
0x1b13   :  { %4361 = vmatprep.subr.mxu0 %v3922_v9 }
0x1b14   :  { %4362 = vmatpush3.msra.mxu0 %v3922_v9 }
0x1b15   :  { %4363 = vmatprep.subr.mxu0 %v3921_v60 }
0x1b16   :  { %4364 = vmatpush3.msra.mxu0 %v3921_v60 }
0x1b17   :  { %4365 = vmatprep.subr.mxu0 %v3920_v61 }
0x1b18   :  { %4366 = vmatpush3.msra.mxu0 %v3920_v61 }
0x1b19   :  { %4367 = vmatprep.subr.mxu0 %v3919_v58 }
0x1b1a   :  { %4368 = vmatpush3.msra.mxu0 %v3919_v58 }
0x1b1b   :  { %4369 = vmatprep.subr.mxu0 %v3918_v62 }
0x1b1c   :  { %4370 = vmatpush3.msra.mxu0 %v3918_v62 }
0x1bcd   :  { %v4343_v15 = vpop.f32.mrf.mxu0 }
0x1bce   :  { %v3472_v16 = vadd.f32 %v4343_v15, %v3393_v50 }
0x1bcf   :  { %v3466_v17 = vpop.f32.mrf.mxu0 }
0x1bd0   :  { %v3476_v18 = vadd.f32 %v3472_v16, %v4939_v4  ;;  %v3467_v19 = vadd.f32 %v3466_v17, %v3393_v50 }
0x1bd2   :  { %v3475_v20 = vadd.f32 %v3467_v19, %v4937_v3  ;;  %v3480_v52 = vsel %vm157_vm2, %v3476_v18, 0.0  ;;  %v3915_v3 = vld [vmem:[%s5239_s6 + $0x38] sm:$0xff] }
0x1bd3   :  { %3481 = vadd.xlane.f32.xlu1 %v3480_v52  ;;  %4344 = vmatprep.subr.mxu1 %v3915_v3 }
0x1bd4   :  { %v3477_v22 = vsel %vm157_vm2, %v3475_v20, 0.0  ;;  %4345 = vmatpush3.msra.mxu1 %v3915_v3 }
0x1bd5   :  { %3478 = vadd.xlane.f32.xlu0 %v3477_v22  ;;  %4346 = vmatprep.subr.mxu1 %v3914_v29 }
0x1bd6   :  { %4347 = vmatpush3.msra.mxu1 %v3914_v29 }
0x1bd7   :  { %4348 = vmatprep.subr.mxu1 %v3913_v31 }
0x1bd8   :  { %4349 = vmatpush3.msra.mxu1 %v3913_v31 }
0x1bd9   :  { %4350 = vmatprep.subr.mxu1 %v3912_v54 }
0x1bda   :  { %4351 = vmatpush3.msra.mxu1 %v3912_v54 }
0x1c5c   :  { %v3482_v23 = vpop.xlane.xlu1 %3481 }
0x1c5d   :  { %v3484_v24 = vmul.f32 0.03125, %v3482_v23 }
0x1c5e   :  { %v3479_v25 = vpop.xlane.xlu0 %3478 }
0x1c5f   :  { %v3483_v45 = vmul.f32 0.03125, %v3479_v25  ;;  %v3486_v26 = vsub.f32 %v3476_v18, %v3484_v24 }
0x1c61   :  { %v3485_v12 = vsub.f32 %v3475_v20, %v3483_v45  ;;  %v3488_v14 = vmul.f32 %v3486_v26, %v3486_v26 }
0x1c63   :  { %v3487_v27 = vmul.f32 %v3485_v12, %v3485_v12  ;;  %v3492_v4 = vsel %vm157_vm2, %v3488_v14, 0.0 }
0x1c65   :  { %v3489_v34 = vsel %vm157_vm2, %v3487_v27, 0.0  ;;  %v3742_v27 = vld [vmem:[%s5241_s9 + $0x8] sm:$0xff] }
0x1c66   :  { %3490 = vadd.xlane.f32.xlu0 %v3489_v34  ;;  %v3741_v34 = vld [vmem:[%s5241_s9] sm:$0xff] }
0x1c6a   :  { %3493 = vadd.xlane.f32.xlu0 %v3492_v4 }
0x1cef   :  { %v3491_v28 = vpop.xlane.xlu0 %3490 }
0x1cf0   :  { %v3495_v43 = vmul.f32 0.03125, %v3491_v28 }
0x1cf2   :  { %v3497_v30 = vadd.f32 1e-05, %v3495_v43 }
0x1cf3   :  { %v3494_v44 = vpop.xlane.xlu0 %3493 }
0x1cf4   :  { %4476 = vrsqrt.f32 %v3497_v30  ;;  %v3496_v46 = vmul.f32 0.03125, %v3494_v44  ;;  %v3738_v30 = vrot.slane %v4950_v5, %v1941_v59 }
0x1cf6   :  { %v3498_v47 = vadd.f32 1e-05, %v3496_v46 }
0x1cf8   :  { %4478 = vrsqrt.f32 %v3498_v47 }
0x1d01   :  { %v4477_v32 = vpop.eup %4476 }
0x1d02   :  { %v3501_v48 = vmul.f32 %v4477_v32, %v3485_v12  ;;  %v3743_v12 = vld [vmem:[%s5241_s9 + $0x10] sm:$0xff] }
0x1d04   :  { %v3507_v49 = vmul.f32 %v3506_v33, %v3501_v48 }
0x1d05   :  { %v4479_v51 = vpop.eup %4478 }
0x1d06   :  { %v3502_v53 = vmul.f32 %v4479_v51, %v3486_v26  ;;  %v3513_v41 = vadd.f32 %v3512_v7, %v3507_v49  ;;  %v3744_v26 = vld [vmem:[%s5241_s9 + $0x18] sm:$0xff] }
0x1d07   :  { %4374 = vmatprep.subr.mxu1 %v3744_v26 }
0x1d08   :  { %v3508_v55 = vmul.f32 %v3506_v33, %v3502_v53  ;;  %4352 = vmatprep.mubr.msk.f32.mxu1 %vm157_vm2, %v3513_v41  ;;  %v3928_v33 = vld [vmem:[%s5242_s10] ss:$0 sm:$0xff] }
0x1d0a   :  { %v3514_v57 = vadd.f32 %v3512_v7, %v3508_v55 }
0x1d0c   :  { %4353 = vmatmul.mubr.msk.f32.vlgmr.msra.gmra.mxu1 %vm157_vm2, %v3514_v57 }
0x1d0d   :  { %4375 = vmatpush3.msra.mxu1 %v3744_v26 }
0x1d0e   :  { %4376 = vmatprep.subr.mxu1 %v3743_v12 }
0x1d0f   :  { %4377 = vmatpush3.msra.mxu1 %v3743_v12 }
0x1d10   :  { %4378 = vmatprep.subr.mxu1 %v3742_v27 }
0x1d11   :  { %4379 = vmatpush3.msra.mxu1 %v3742_v27 }
0x1d12   :  { %4380 = vmatprep.subr.mxu1 %v3741_v34 }
0x1d13   :  { %4381 = vmatpush3.msra.mxu1 %v3741_v34 }
0x1dcc   :  { %v4354_v0 = vpop.f32.mrf.mxu1 }
0x1dcd   :  { %v3602_v42 = vadd.f32 %v4354_v0, %v3523_v63 }
0x1dce   :  { %v3596_v1 = vpop.f32.mrf.mxu1 }
0x1dcf   :  { %v3597_v2 = vadd.f32 %v3596_v1, %v3523_v63  ;;  %v3606_v6 = vmax.f32 %v3602_v42, 0.0 }
0x1dd1   :  { %v3605_v37 = vmax.f32 %v3597_v2, 0.0 }
0x1dd3   :  { %4371 = vmatprep.mubr.msk.f32.mxu0 %vm1823_vm7, %v3605_v37 }
0x1dd4   :  { %4372 = vmatmul.mubr.msk.f32.vlgmr.msra.gmra.mxu0 %vm1823_vm7, %v3606_v6 }
0x1e94   :  { %v4373_v10 = vpop.f32.mrf.mxu0 }
0x1e95   :  { %v3698_v13 = vadd.f32 %v4373_v10, %v3619_v8 }
0x1e96   :  { %v3692_v36 = vpop.f32.mrf.mxu0 }
0x1e97   :  { %v3702_v50 = vadd.f32 %v3698_v13, %v3514_v57  ;;  %v3693_v15 = vadd.f32 %v3692_v36, %v3619_v8 }
0x1e99   :  { %v3701_v11 = vadd.f32 %v3693_v15, %v3513_v41  ;;  %v3706_v16 = vsel %vm157_vm2, %v3702_v50, 0.0 }
0x1e9a   :  { %3707 = vadd.xlane.f32.xlu0 %v3706_v16 }
0x1e9b   :  { %v3703_v17 = vsel %vm157_vm2, %v3701_v11, 0.0 }
0x1e9c   :  { %3704 = vadd.xlane.f32.xlu1 %v3703_v17 }
0x1f23   :  { %v3708_v18 = vpop.xlane.xlu0 %3707 }
0x1f24   :  { %v3710_v19 = vmul.f32 0.03125, %v3708_v18 }
0x1f25   :  { %v3705_v20 = vpop.xlane.xlu1 %3704 }
0x1f26   :  { %v3712_v52 = vsub.f32 %v3702_v50, %v3710_v19  ;;  %v3709_v22 = vmul.f32 0.03125, %v3705_v20 }
0x1f28   :  { %v3711_v23 = vsub.f32 %v3701_v11, %v3709_v22  ;;  %v3714_v24 = vmul.f32 %v3712_v52, %v3712_v52 }
0x1f2a   :  { %v3718_v21 = vsel %vm157_vm2, %v3714_v24, 0.0  ;;  %v3713_v25 = vmul.f32 %v3711_v23, %v3711_v23 }
0x1f2b   :  { %3719 = vadd.xlane.f32.xlu0 %v3718_v21 }
0x1f2c   :  { %v3715_v45 = vsel %vm157_vm2, %v3713_v25, 0.0 }
0x1f2d   :  { %3716 = vadd.xlane.f32.xlu1 %v3715_v45 }
0x1fb4   :  { %v3720_v14 = vpop.xlane.xlu0 %3719 }
0x1fb5   :  { %v3722_v4 = vmul.f32 0.03125, %v3720_v14 }
0x1fb6   :  { %v3717_v3 = vpop.xlane.xlu1 %3716 }
0x1fb7   :  { %v3724_v29 = vadd.f32 1e-05, %v3722_v4  ;;  %v3721_v31 = vmul.f32 0.03125, %v3717_v3 }
0x1fb9   :  { %4480 = vrsqrt.f32 %v3724_v29  ;;  %v3723_v54 = vadd.f32 1e-05, %v3721_v31 }
0x1fbb   :  { %4482 = vrsqrt.f32 %v3723_v54 }
0x1fc6   :  { %v4481_v38 = vpop.eup %4480 }
0x1fc7   :  { %v3728_v40 = vmul.f32 %v4481_v38, %v3712_v52 }
0x1fc8   :  { %v4483_v9 = vpop.eup %4482 }
0x1fc9   :  { %v3727_v28 = vmul.f32 %v4483_v9, %v3711_v23  ;;  %v3734_v43 = vmul.f32 %v3732_v39, %v3728_v40 }
0x1fcb   :  { %v3733_v44 = vmul.f32 %v3732_v39, %v3727_v28  ;;  %v3740_v47 = vadd.f32 %v3738_v30, %v3734_v43 }
0x1fcd   :  { %v3739_v46 = vadd.f32 %v3738_v30, %v3733_v44 }
0x1fcf   :  { %4382 = vmatprep.mubr.msk.f32.mxu1 %vm157_vm2, %v3739_v46 }
0x1fd0   :  { %4383 = vmatmul.mubr.msk.f32.vlgmr.msra.gmra.mxu1 %vm157_vm2, %v3740_v47 }
0x2090   :  { %v4384_v56 = vpop.f32.mrf.mxu1 }
0x2091   :  { %v3830_v32 = vadd.f32 %v4384_v56, %v3928_v33 }
0x2092   :  { %v3824_v48 = vpop.f32.mrf.mxu1 }
0x2093   :  { %3834 = vst [vmem:[%s5243_s11 + $0x8] sm:$0xff] %v3830_v32  ;;  %v3825_v35 = vadd.f32 %v3928_v33, %v3824_v48 }
0x2095   :  { %3833 = vst [vmem:[%s5243_s11] sm:$0xff] %v3825_v35 }

</bundles_post_ra>
